<compile_context>
chip_gen: v7x
topology: tpu7x:2x2x1
jax: 0.10.0
libtpu: 0.0.40
codegen_flags: <defaults>
</compile_context>

<pallas_src>
import functools

import jax
import jax.numpy as jnp
from jax.experimental import pallas as pl
from jax.experimental.pallas import tpu as pltpu


def encoder_block_kernel(p_ref, w_ref, b_ref, g_ref, beta_ref, o_ref,
                         *, m, eps, act, transpose_out):
    """Fused conv-as-matmul (all samples) + train-mode BatchNorm + activation.

    p_ref    : (M, K)   im2col patches for ALL samples, M = N*OH*OW, K = KH*KW*C
    w_ref    : (K, OC)  conv weight, K ordered (kh, kw, c)
    b/g/beta : (1, OC)  conv bias / BN gamma / BN beta
    o_ref    : (OC, M) if transpose_out else (M, OC)
    """
    # One batched MXU matmul across all samples.
    y = jnp.dot(p_ref[...], w_ref[...], preferred_element_type=jnp.float32)  # (M, OC)
    y = y + b_ref[...]

    # Train-mode BatchNorm statistics over the (N, H, W) axes == rows of y.
    inv_m = 1.0 / float(m)
    mean = jnp.sum(y, axis=0, keepdims=True) * inv_m          # (1, OC)
    d = y - mean                                              # two-pass variance
    var = jnp.sum(d * d, axis=0, keepdims=True) * inv_m       # biased (PyTorch train mode)

    scale = g_ref[...] * jax.lax.rsqrt(var + eps)             # (1, OC)
    shift = beta_ref[...] - mean * scale
    z = y * scale + shift

    if act == "relu":
        z = jnp.maximum(z, 0.0)
    else:
        z = jnp.tanh(z)

    if transpose_out:
        o_ref[...] = z.T          # (OC, M): lane-dense store when OC is small
    else:
        o_ref[...] = z            # (M, OC): already lane-dense for OC >= 128


def encoder_block_forward(x_nchw, weight, bias, gamma, beta, *, stride, padding,
                          activation="relu", eps=1e-5):
    assert activation in ("relu", "tanh"), f"unsupported activation: {activation}"
    N, C, H, W = x_nchw.shape
    OC, IC, KH, KW = weight.shape
    assert IC == C

    OH = (H + 2 * padding - KH) // stride + 1
    OW = (W + 2 * padding - KW) // stride + 1
    M = N * OH * OW
    K = KH * KW * C

    # Wrapper-side (XLA) im2col: the patch slab is small here, so building it outside
    # the kernel is cheaper than 9 masked 4-lane stores per sample inside it.
    x = jnp.transpose(x_nchw, (0, 2, 3, 1)).astype(jnp.float32)           # NHWC
    xp = jnp.pad(x, ((0, 0), (padding, padding), (padding, padding), (0, 0)))
    cols = []
    for kh in range(KH):
        for kw in range(KW):
            cols.append(xp[:, kh:kh + (OH - 1) * stride + 1:stride,
                            kw:kw + (OW - 1) * stride + 1:stride, :])
    patches = jnp.concatenate(cols, axis=-1).reshape(M, K)                # (M, K), (kh,kw,c)

    # PyTorch weight (OC, IC, KH, KW) -> (K, OC), K ordered (kh, kw, c) to match patches.
    w2d = jnp.transpose(weight, (2, 3, 1, 0)).reshape(K, OC).astype(jnp.float32)
    b_row = bias.reshape(1, OC).astype(jnp.float32)
    g_row = gamma.reshape(1, OC).astype(jnp.float32)
    beta_row = beta.reshape(1, OC).astype(jnp.float32)

    transpose_out = OC < 128
    out_shape = (OC, M) if transpose_out else (M, OC)

    # Explicit VMEM budget from the real footprint (inputs + output + y working set),
    # capped so it stays legal on v7x (64 MiB physical) as well as v5e/v6e.
    need = 4 * (M * K + K * OC + 3 * OC + 2 * M * OC) + (4 << 20)
    vmem_limit = int(min(48 << 20, max(32 << 20, need)))

    kernel = functools.partial(encoder_block_kernel, m=M, eps=eps,
                               act=activation, transpose_out=transpose_out)

    out = pl.pallas_call(
        kernel,
        out_shape=jax.ShapeDtypeStruct(out_shape, jnp.float32),
        grid=(1,),
        in_specs=[
            pl.BlockSpec((M, K), lambda i: (0, 0)),
            pl.BlockSpec((K, OC), lambda i: (0, 0)),
            pl.BlockSpec((1, OC), lambda i: (0, 0)),
            pl.BlockSpec((1, OC), lambda i: (0, 0)),
            pl.BlockSpec((1, OC), lambda i: (0, 0)),
        ],
        out_specs=pl.BlockSpec(out_shape, lambda i: (0, 0)),
        compiler_params=pltpu.CompilerParams(
            dimension_semantics=("arbitrary",),
            vmem_limit_bytes=vmem_limit),
    )(patches, w2d, b_row, g_row, beta_row)

    # Tiny wrapper-side layout fix-up back to NCHW.
    if transpose_out:
        return jnp.transpose(out.reshape(OC, N, OH, OW), (1, 0, 2, 3))
    return jnp.transpose(out.reshape(N, OH, OW, OC), (0, 3, 1, 2))


def _reference(x_nchw, weight, bias, gamma, beta, *, stride, padding,
               activation="relu", eps=1e-5):
    """Plain-JAX reference (conv + training-mode BN + activation)."""
    y = jax.lax.conv_general_dilated(
        x_nchw.astype(jnp.float32), weight.astype(jnp.float32),
        window_strides=(stride, stride),
        padding=[(padding, padding), (padding, padding)],
        dimension_numbers=("NCHW", "OIHW", "NCHW"))
    y = y + bias.reshape(1, -1, 1, 1)
    mean = jnp.mean(y, axis=(0, 2, 3), keepdims=True)
    var = jnp.mean((y - mean) ** 2, axis=(0, 2, 3), keepdims=True)
    y = (y - mean) / jnp.sqrt(var + eps)
    y = y * gamma.reshape(1, -1, 1, 1) + beta.reshape(1, -1, 1, 1)
    return jnp.maximum(y, 0.0) if activation == "relu" else jnp.tanh(y)


if __name__ == "__main__":
    # EncoderBlock(in_channels=4, out_channels=8, kernel_size=3, stride=1, padding=1)
    N, C, H, W = 2, 4, 16, 16
    OC, KH, KW = 8, 3, 3
    stride, padding = 1, 1

    key = jax.random.PRNGKey(0)
    kx, kw_, kb = jax.random.split(key, 3)
    x = jax.random.normal(kx, (N, C, H, W), dtype=jnp.float32)
    weight = jax.random.normal(kw_, (OC, C, KH, KW), dtype=jnp.float32) * 0.1
    bias = jax.random.normal(kb, (OC,), dtype=jnp.float32) * 0.1
    gamma = jnp.ones((OC,), dtype=jnp.float32)   # BatchNorm2d default affine init
    beta = jnp.zeros((OC,), dtype=jnp.float32)

    out = encoder_block_forward(x, weight, bias, gamma, beta,
                                stride=stride, padding=padding, activation="relu")
    out = jax.block_until_ready(out)

    ref = _reference(x, weight, bias, gamma, beta,
                     stride=stride, padding=padding, activation="relu")
    assert out.shape == (N, OC, H, W), out.shape
    err = float(jnp.max(jnp.abs(out - ref)))
    assert jnp.allclose(out, ref, atol=1e-3, rtol=1e-3), err

    print("KERNEL_OK")
</pallas_src>

<mosaic_0001>
module attributes {stable_mosaic.version = 11 : i64} {
  func.func @encoder_block_kernel(%arg0: i32, %arg1: memref<512x36xf32, #tpu.memory_space<vmem>>, %arg2: memref<36x8xf32, #tpu.memory_space<vmem>>, %arg3: memref<1x8xf32, #tpu.memory_space<vmem>>, %arg4: memref<1x8xf32, #tpu.memory_space<vmem>>, %arg5: memref<1x8xf32, #tpu.memory_space<vmem>>, %arg6: memref<8x512xf32, #tpu.memory_space<vmem>>) attributes {dimension_semantics = [#tpu.dimension_semantics<arbitrary>], iteration_bounds = array<i64: 1>, scalar_prefetch = 0 : i64, scratch_operands = 0 : i64, tpu.core_type = #tpu.core_type<tc>, window_params = [{pipeline_mode = #tpu.pipeline_mode<synchronous>, transform_indices = @transform_0, window_bounds = array<i64: 512, 36>}, {pipeline_mode = #tpu.pipeline_mode<synchronous>, transform_indices = @transform_1, window_bounds = array<i64: 36, 8>}, {pipeline_mode = #tpu.pipeline_mode<synchronous>, transform_indices = @transform_2, window_bounds = array<i64: 1, 8>}, {pipeline_mode = #tpu.pipeline_mode<synchronous>, transform_indices = @transform_3, window_bounds = array<i64: 1, 8>}, {pipeline_mode = #tpu.pipeline_mode<synchronous>, transform_indices = @transform_4, window_bounds = array<i64: 1, 8>}, {pipeline_mode = #tpu.pipeline_mode<synchronous>, transform_indices = @transform_5, window_bounds = array<i64: 8, 512>}]} {
    %c0 = arith.constant 0 : index
    %c0_0 = arith.constant 0 : index
    %0 = vector.load %arg1[%c0, %c0_0] : memref<512x36xf32, #tpu.memory_space<vmem>>, vector<512x36xf32>
    %c0_1 = arith.constant 0 : index
    %c0_2 = arith.constant 0 : index
    %1 = vector.load %arg2[%c0_1, %c0_2] : memref<36x8xf32, #tpu.memory_space<vmem>>, vector<36x8xf32>
    %cst = arith.constant dense<0.000000e+00> : vector<512x8xf32>
    %2 = tpu.matmul %0, %1, %cst {dimension_numbers = #tpu.dot_dimension_numbers<[1], [0], [0], [1], [0, 0, 1, 1], [], []>} : vector<512x36xf32>, vector<36x8xf32>, vector<512x8xf32> -> vector<512x8xf32>
    %c0_3 = arith.constant 0 : index
    %c0_4 = arith.constant 0 : index
    %3 = vector.load %arg3[%c0_3, %c0_4] : memref<1x8xf32, #tpu.memory_space<vmem>>, vector<1x8xf32>
    %4 = vector.broadcast %3 : vector<1x8xf32> to vector<512x8xf32>
    %5 = arith.addf %2, %4 : vector<512x8xf32>
    %cst_5 = arith.constant dense<0.000000e+00> : vector<8xf32>
    %6 = vector.multi_reduction <add>, %5, %cst_5 [0] : vector<512x8xf32> to vector<8xf32>
    %7 = vector.shape_cast %6 : vector<8xf32> to vector<1x8xf32>
    %cst_6 = arith.constant 0.001953125 : f32
    %8 = vector.broadcast %cst_6 : f32 to vector<1x8xf32>
    %9 = arith.mulf %7, %8 : vector<1x8xf32>
    %10 = vector.broadcast %9 : vector<1x8xf32> to vector<512x8xf32>
    %11 = arith.subf %5, %10 : vector<512x8xf32>
    %12 = arith.mulf %11, %11 : vector<512x8xf32>
    %cst_7 = arith.constant dense<0.000000e+00> : vector<8xf32>
    %13 = vector.multi_reduction <add>, %12, %cst_7 [0] : vector<512x8xf32> to vector<8xf32>
    %14 = vector.shape_cast %13 : vector<8xf32> to vector<1x8xf32>
    %cst_8 = arith.constant 0.001953125 : f32
    %15 = vector.broadcast %cst_8 : f32 to vector<1x8xf32>
    %16 = arith.mulf %14, %15 : vector<1x8xf32>
    %c0_9 = arith.constant 0 : index
    %c0_10 = arith.constant 0 : index
    %17 = vector.load %arg4[%c0_9, %c0_10] : memref<1x8xf32, #tpu.memory_space<vmem>>, vector<1x8xf32>
    %cst_11 = arith.constant 9.99999974E-6 : f32
    %18 = vector.broadcast %cst_11 : f32 to vector<1x8xf32>
    %19 = arith.addf %16, %18 : vector<1x8xf32>
    %20 = math.rsqrt %19 : vector<1x8xf32>
    %21 = arith.mulf %17, %20 : vector<1x8xf32>
    %c0_12 = arith.constant 0 : index
    %c0_13 = arith.constant 0 : index
    %22 = vector.load %arg5[%c0_12, %c0_13] : memref<1x8xf32, #tpu.memory_space<vmem>>, vector<1x8xf32>
    %23 = arith.mulf %9, %21 : vector<1x8xf32>
    %24 = arith.subf %22, %23 : vector<1x8xf32>
    %25 = vector.broadcast %21 : vector<1x8xf32> to vector<512x8xf32>
    %26 = arith.mulf %5, %25 : vector<512x8xf32>
    %27 = vector.broadcast %24 : vector<1x8xf32> to vector<512x8xf32>
    %28 = arith.addf %26, %27 : vector<512x8xf32>
    %cst_14 = arith.constant 0.000000e+00 : f32
    %29 = vector.broadcast %cst_14 : f32 to vector<512x8xf32>
    %30 = arith.maximumf %28, %29 : vector<512x8xf32>
    %31 = tpu.transpose %30, [1, 0] : vector<512x8xf32> -> vector<8x512xf32>
    %c0_15 = arith.constant 0 : index
    %c0_16 = arith.constant 0 : index
    %32 = vector.load %arg6[%c0_15, %c0_16] : memref<8x512xf32, #tpu.memory_space<vmem>>, vector<8x512xf32>
    tpu.vector_store %arg6[%c0_15, %c0_16], %31 {strides = array<i32>} : memref<8x512xf32, #tpu.memory_space<vmem>>, vector<8x512xf32>,
    return
  }
  func.func @transform_0(%arg0: i32) -> (i32, i32) {
    %c0_i32 = arith.constant 0 : i32
    %c0_i32_0 = arith.constant 0 : i32
    %c0_i32_1 = arith.constant 0 : i32
    return %c0_i32, %c0_i32_0 : i32, i32
  }
  func.func @transform_1(%arg0: i32) -> (i32, i32) {
    %c0_i32 = arith.constant 0 : i32
    %c0_i32_0 = arith.constant 0 : i32
    %c0_i32_1 = arith.constant 0 : i32
    return %c0_i32, %c0_i32_0 : i32, i32
  }
  func.func @transform_2(%arg0: i32) -> (i32, i32) {
    %c0_i32 = arith.constant 0 : i32
    %c0_i32_0 = arith.constant 0 : i32
    %c0_i32_1 = arith.constant 0 : i32
    return %c0_i32, %c0_i32_0 : i32, i32
  }
  func.func @transform_3(%arg0: i32) -> (i32, i32) {
    %c0_i32 = arith.constant 0 : i32
    %c0_i32_0 = arith.constant 0 : i32
    %c0_i32_1 = arith.constant 0 : i32
    return %c0_i32, %c0_i32_0 : i32, i32
  }
  func.func @transform_4(%arg0: i32) -> (i32, i32) {
    %c0_i32 = arith.constant 0 : i32
    %c0_i32_0 = arith.constant 0 : i32
    %c0_i32_1 = arith.constant 0 : i32
    return %c0_i32, %c0_i32_0 : i32, i32
  }
  func.func @transform_5(%arg0: i32) -> (i32, i32) {
    %c0_i32 = arith.constant 0 : i32
    %c0_i32_0 = arith.constant 0 : i32
    %c0_i32_1 = arith.constant 0 : i32
    return %c0_i32, %c0_i32_0 : i32, i32
  }
}

</mosaic_0001>

<bundles_post_ra>
// kernel: tpu_custom_call.1
= control target key start
LH: loop header
LB: loop body
LE: loop exit
PB: predicated region body
PF: predicated region fallthrough
CT: control target
= control target key end

     0   :  { %vm97_vm0 = vcmask 293888   ;;  %vm290_vm1 = vcmask 1043456   ;;  %s2892_s0 = inlined_call_operand.vmem [shape: f32[512,36], index: 0, kind: input, shape index: {}]   ;;  %s2893_s1 = inlined_call_operand.vmem [shape: f32[36,8], index: 1, kind: input, shape index: {}]   ;;  %s2894_s2 = inlined_call_operand.vmem [shape: f32[1,8], index: 2, kind: input, shape index: {}]   ;;  %s2895_s3 = inlined_call_operand.vmem [shape: f32[1,8], index: 3, kind: input, shape index: {}]   ;;  %s2896_s4 = inlined_call_operand.vmem [shape: f32[1,8], index: 4, kind: input, shape index: {}]   ;;  %s2897_s5 = inlined_call_operand.hbm [shape: f32[8,512], index: 5, kind: output, shape index: {}]  }
   0x1   :  { %v85_v0 = vld [vmem:[%s2893_s1] sm:$0xff]  ;;  %v86_v1 = vld [vmem:[%s2893_s1 + $0x8] sm:$0xff]  ;;  %v87_v2 = vld [vmem:[%s2893_s1 + $0x10] sm:$0xff] }
   0x2   :  { %v1674_v3 = vpack.c.bf16 %v86_v1, %v85_v0  ;;  %v88_v4 = vld [vmem:[%s2893_s1 + $0x18] sm:$0xff]  ;;  %v21_v5 = vld [vmem:[%s2892_s0] sm:$0xff]  ;;  %v22_v8 = vld [vmem:[%s2892_s0 + $0x8] sm:$0xff] }
   0x3   :  { %v1678_v6 = vpack.c.bf16 %v88_v4, %v87_v2  ;;  %1578 = vmatprep.mubr.msk.f32.mxu0 %vm97_vm0, %v21_v5  ;;  %v89_v7 = vld [vmem:[%s2893_s1 + $0x20] sm:$0xf]  ;;  %v23_v9 = vld [vmem:[%s2892_s0 + $0x10] sm:$0xff]  ;;  %v54_v11 = vld [vmem:[%s2892_s0 + $0x108] sm:$0xff] }
   0x4   :  { %1675 = vmatprep.subr.bf16.mxu0 %v1674_v3  ;;  %1682 = vmatprep.subr.bf16.mxu1 %v1674_v3  ;;  %v53_v10 = vld [vmem:[%s2892_s0 + $0x100] sm:$0xff]  ;;  %v55_v12 = vld [vmem:[%s2892_s0 + $0x110] sm:$0xff]  ;;  %v24_v13 = vld [vmem:[%s2892_s0 + $0x18] sm:$0xff] }
   0x5   :  { %1677 = vmatpush3.bf16.msra.mxu0 %v1674_v3  ;;  %1685 = vmatpush3.bf16.msra.mxu1 %v1674_v3  ;;  %v25_v14 = vld [vmem:[%s2892_s0 + $0x20] sm:$0xff]  ;;  %v56_v15 = vld [vmem:[%s2892_s0 + $0x118] sm:$0xff]  ;;  %v26_v17 = vld [vmem:[%s2892_s0 + $0x28] sm:$0xff] }
   0x6   :  { %1679 = vmatprep.subr.bf16.mxu0 %v1678_v6  ;;  %1683 = vmatprep.subr.bf16.mxu1 %v1678_v6  ;;  %v57_v16 = vld [vmem:[%s2892_s0 + $0x120] sm:$0xff]  ;;  %v27_v18 = vld [vmem:[%s2892_s0 + $0x30] sm:$0xff]  ;;  %v58_v19 = vld [vmem:[%s2892_s0 + $0x128] sm:$0xff] }
   0x7   :  { %1626 = vmatprep.mubr.msk.f32.mxu1 %vm97_vm0, %v53_v10  ;;  %v59_v20 = vld [vmem:[%s2892_s0 + $0x130] sm:$0xff]  ;;  %v28_v21 = vld [vmem:[%s2892_s0 + $0x38] sm:$0xff]  ;;  %v29_v22 = vld [vmem:[%s2892_s0 + $0x40] sm:$0xff] }
   0x8   :  { %v60_v23 = vld [vmem:[%s2892_s0 + $0x138] sm:$0xff] }
   0x9   :  { %1681 = vmatpush3.bf16.msra.mxu0 %v1678_v6  ;;  %1686 = vmatpush3.bf16.msra.mxu1 %v1678_v6 }
   0xa   :  { %1576 = vmatprep.subr.msk.mxu0 %vm290_vm1, %v89_v7  ;;  %1684 = vmatprep.subr.msk.mxu1 %vm290_vm1, %v89_v7 }
   0xd   :  { %1577 = vmatpush3.msk.msra.mxu0 %vm290_vm1, %v89_v7  ;;  %1687 = vmatpush3.msk.msra.mxu1 %vm290_vm1, %v89_v7 }
   0xe   :  { %1579 = vmatmul.mubr.msk.f32.vlgmr.msra.gmra.mrb[0].mxu0 %vm97_vm0, %v22_v8  ;;  %1627 = vmatmul.mubr.msk.f32.vlgmr.msra.gmra.mrb[0].mxu1 %vm97_vm0, %v54_v11 }
   0xf   :  { %1581 = vmatprep.mubr.msk.f32.mxu0 %vm97_vm0, %v23_v9  ;;  %1629 = vmatprep.mubr.msk.f32.mxu1 %vm97_vm0, %v55_v12 }
  0x12   :  { %1582 = vmatmul.mubr.msk.f32.gmra.mrb[2].mxu0 %vm97_vm0, %v24_v13  ;;  %1630 = vmatmul.mubr.msk.f32.gmra.mrb[2].mxu1 %vm97_vm0, %v56_v15 }
  0x13   :  { %1584 = vmatprep.mubr.msk.f32.mxu0 %vm97_vm0, %v25_v14  ;;  %1632 = vmatprep.mubr.msk.f32.mxu1 %vm97_vm0, %v57_v16 }
  0x16   :  { %1585 = vmatmul.mubr.msk.f32.gmra.mrb[4].mxu0 %vm97_vm0, %v26_v17  ;;  %1633 = vmatmul.mubr.msk.f32.gmra.mrb[4].mxu1 %vm97_vm0, %v58_v19 }
  0x17   :  { %1587 = vmatprep.mubr.msk.f32.mxu0 %vm97_vm0, %v27_v18  ;;  %1635 = vmatprep.mubr.msk.f32.mxu1 %vm97_vm0, %v59_v20 }
  0x18   :  { %10 = vsyncpa [#allocation3], 0  ;;  %v61_v24 = vld [vmem:[%s2892_s0 + $0x140] sm:$0xff]  ;;  %v30_v25 = vld [vmem:[%s2892_s0 + $0x48] sm:$0xff]  ;;  %vm679_vm2 = vcmask 64512  }
  0x19   :  { %v31_v26 = vld [vmem:[%s2892_s0 + $0x50] sm:$0xff]  ;;  %v62_v27 = vld [vmem:[%s2892_s0 + $0x148] sm:$0xff]  ;;  %v32_v29 = vld [vmem:[%s2892_s0 + $0x58] sm:$0xff] }
  0x1a   :  { %1588 = vmatmul.mubr.msk.f32.gmra.mrb[6].mxu0 %vm97_vm0, %v28_v21  ;;  %1636 = vmatmul.mubr.msk.f32.gmra.mrb[6].mxu1 %vm97_vm0, %v60_v23  ;;  %v63_v28 = vld [vmem:[%s2892_s0 + $0x150] sm:$0xff]  ;;  %v33_v30 = vld [vmem:[%s2892_s0 + $0x60] sm:$0xff]  ;;  %v64_v31 = vld [vmem:[%s2892_s0 + $0x158] sm:$0xff] }
  0x1b   :  { %1590 = vmatprep.mubr.msk.f32.mxu0 %vm97_vm0, %v29_v22  ;;  %1638 = vmatprep.mubr.msk.f32.mxu1 %vm97_vm0, %v61_v24  ;;  %v65_v32 = vld [vmem:[%s2892_s0 + $0x160] sm:$0xff]  ;;  %v34_v33 = vld [vmem:[%s2892_s0 + $0x68] sm:$0xff]  ;;  %v35_v34 = vld [vmem:[%s2892_s0 + $0x70] sm:$0xff] }
  0x1c   :  { %v66_v35 = vld [vmem:[%s2892_s0 + $0x168] sm:$0xff]  ;;  %v67_v36 = vld [vmem:[%s2892_s0 + $0x170] sm:$0xff]  ;;  %v36_v37 = vld [vmem:[%s2892_s0 + $0x78] sm:$0xff] }
  0x1d   :  { %v37_v38 = vld [vmem:[%s2892_s0 + $0x80] sm:$0xff]  ;;  %v68_v39 = vld [vmem:[%s2892_s0 + $0x178] sm:$0xff]  ;;  %v38_v41 = vld [vmem:[%s2892_s0 + $0x88] sm:$0xff] }
  0x1e   :  { %1591 = vmatmul.mubr.msk.f32.gmra.mrb[8].mxu0 %vm97_vm0, %v30_v25  ;;  %1639 = vmatmul.mubr.msk.f32.gmra.mrb[8].mxu1 %vm97_vm0, %v62_v27  ;;  %v69_v40 = vld [vmem:[%s2892_s0 + $0x180] sm:$0xff]  ;;  %v39_v42 = vld [vmem:[%s2892_s0 + $0x90] sm:$0xff]  ;;  %v70_v43 = vld [vmem:[%s2892_s0 + $0x188] sm:$0xff] }
  0x1f   :  { %1593 = vmatprep.mubr.msk.f32.mxu0 %vm97_vm0, %v31_v26  ;;  %1641 = vmatprep.mubr.msk.f32.mxu1 %vm97_vm0, %v63_v28  ;;  %v71_v44 = vld [vmem:[%s2892_s0 + $0x190] sm:$0xff]  ;;  %v40_v45 = vld [vmem:[%s2892_s0 + $0x98] sm:$0xff]  ;;  %v41_v46 = vld [vmem:[%s2892_s0 + $0xa0] sm:$0xff] }
  0x20   :  { %v72_v47 = vld [vmem:[%s2892_s0 + $0x198] sm:$0xff]  ;;  %v73_v48 = vld [vmem:[%s2892_s0 + $0x1a0] sm:$0xff]  ;;  %v42_v49 = vld [vmem:[%s2892_s0 + $0xa8] sm:$0xff] }
  0x21   :  { %v43_v50 = vld [vmem:[%s2892_s0 + $0xb0] sm:$0xff]  ;;  %v74_v51 = vld [vmem:[%s2892_s0 + $0x1a8] sm:$0xff]  ;;  %v44_v53 = vld [vmem:[%s2892_s0 + $0xb8] sm:$0xff] }
  0x22   :  { %1594 = vmatmul.mubr.msk.f32.gmra.mrb[10].mxu0 %vm97_vm0, %v32_v29  ;;  %1642 = vmatmul.mubr.msk.f32.gmra.mrb[10].mxu1 %vm97_vm0, %v64_v31  ;;  %v75_v52 = vld [vmem:[%s2892_s0 + $0x1b0] sm:$0xff]  ;;  %v45_v54 = vld [vmem:[%s2892_s0 + $0xc0] sm:$0xff]  ;;  %v76_v55 = vld [vmem:[%s2892_s0 + $0x1b8] sm:$0xff] }
  0x23   :  { %1596 = vmatprep.mubr.msk.f32.mxu0 %vm97_vm0, %v33_v30  ;;  %1644 = vmatprep.mubr.msk.f32.mxu1 %vm97_vm0, %v65_v32  ;;  %v77_v56 = vld [vmem:[%s2892_s0 + $0x1c0] sm:$0xff]  ;;  %v46_v57 = vld [vmem:[%s2892_s0 + $0xc8] sm:$0xff]  ;;  %v47_v58 = vld [vmem:[%s2892_s0 + $0xd0] sm:$0xff] }
  0x24   :  { %v78_v59 = vld [vmem:[%s2892_s0 + $0x1c8] sm:$0xff]  ;;  %v79_v60 = vld [vmem:[%s2892_s0 + $0x1d0] sm:$0xff]  ;;  %v48_v61 = vld [vmem:[%s2892_s0 + $0xd8] sm:$0xff] }
  0x25   :  { %v49_v62 = vld [vmem:[%s2892_s0 + $0xe0] sm:$0xff]  ;;  %v80_v63 = vld [vmem:[%s2892_s0 + $0x1d8] sm:$0xff]  ;;  %v50_v1 = vld [vmem:[%s2892_s0 + $0xe8] sm:$0xff] }
  0x26   :  { %1597 = vmatmul.mubr.msk.f32.gmra.mrb[12].mxu0 %vm97_vm0, %v34_v33  ;;  %1645 = vmatmul.mubr.msk.f32.gmra.mrb[12].mxu1 %vm97_vm0, %v66_v35  ;;  %v81_v0 = vld [vmem:[%s2892_s0 + $0x1e0] sm:$0xff]  ;;  %v51_v2 = vld [vmem:[%s2892_s0 + $0xf0] sm:$0xff]  ;;  %v82_v3 = vld [vmem:[%s2892_s0 + $0x1e8] sm:$0xff] }
  0x27   :  { %1599 = vmatprep.mubr.msk.f32.mxu0 %vm97_vm0, %v35_v34  ;;  %1647 = vmatprep.mubr.msk.f32.mxu1 %vm97_vm0, %v67_v36  ;;  %v83_v4 = vld [vmem:[%s2892_s0 + $0x1f0] sm:$0xff]  ;;  %v52_v5 = vld [vmem:[%s2892_s0 + $0xf8] sm:$0xff]  ;;  %v2020_v7 = vld [vmem:[%s2894_s2] ss:$0 sm:$0xff] }
  0x28   :  { %v84_v6 = vld [vmem:[%s2892_s0 + $0x1f8] sm:$0xff] }
  0x2a   :  { %1600 = vmatmul.mubr.msk.f32.gmra.mrb[14].mxu0 %vm97_vm0, %v36_v37  ;;  %1648 = vmatmul.mubr.msk.f32.gmra.mrb[14].mxu1 %vm97_vm0, %v68_v39 }
  0x2b   :  { %1602 = vmatprep.mubr.msk.f32.mxu0 %vm97_vm0, %v37_v38  ;;  %1650 = vmatprep.mubr.msk.f32.mxu1 %vm97_vm0, %v69_v40 }
  0x2e   :  { %1603 = vmatmul.mubr.msk.f32.gmra.mrb[16].mxu0 %vm97_vm0, %v38_v41  ;;  %1651 = vmatmul.mubr.msk.f32.gmra.mrb[16].mxu1 %vm97_vm0, %v70_v43 }
  0x2f   :  { %1605 = vmatprep.mubr.msk.f32.mxu0 %vm97_vm0, %v39_v42  ;;  %1653 = vmatprep.mubr.msk.f32.mxu1 %vm97_vm0, %v71_v44 }
  0x32   :  { %1606 = vmatmul.mubr.msk.f32.gmra.mrb[18].mxu0 %vm97_vm0, %v40_v45  ;;  %1654 = vmatmul.mubr.msk.f32.gmra.mrb[18].mxu1 %vm97_vm0, %v72_v47 }
  0x33   :  { %1608 = vmatprep.mubr.msk.f32.mxu0 %vm97_vm0, %v41_v46  ;;  %1656 = vmatprep.mubr.msk.f32.mxu1 %vm97_vm0, %v73_v48 }
  0x36   :  { %1609 = vmatmul.mubr.msk.f32.gmra.mrb[20].mxu0 %vm97_vm0, %v42_v49  ;;  %1657 = vmatmul.mubr.msk.f32.gmra.mrb[20].mxu1 %vm97_vm0, %v74_v51 }
  0x37   :  { %1611 = vmatprep.mubr.msk.f32.mxu0 %vm97_vm0, %v43_v50  ;;  %1659 = vmatprep.mubr.msk.f32.mxu1 %vm97_vm0, %v75_v52 }
  0x3a   :  { %1612 = vmatmul.mubr.msk.f32.gmra.mrb[22].mxu0 %vm97_vm0, %v44_v53  ;;  %1660 = vmatmul.mubr.msk.f32.gmra.mrb[22].mxu1 %vm97_vm0, %v76_v55 }
  0x3b   :  { %1614 = vmatprep.mubr.msk.f32.mxu0 %vm97_vm0, %v45_v54  ;;  %1662 = vmatprep.mubr.msk.f32.mxu1 %vm97_vm0, %v77_v56 }
  0x3e   :  { %1615 = vmatmul.mubr.msk.f32.gmra.mrb[24].mxu0 %vm97_vm0, %v46_v57  ;;  %1663 = vmatmul.mubr.msk.f32.gmra.mrb[24].mxu1 %vm97_vm0, %v78_v59 }
  0x3f   :  { %1617 = vmatprep.mubr.msk.f32.mxu0 %vm97_vm0, %v47_v58  ;;  %1665 = vmatprep.mubr.msk.f32.mxu1 %vm97_vm0, %v79_v60 }
  0x42   :  { %1618 = vmatmul.mubr.msk.f32.gmra.mrb[26].mxu0 %vm97_vm0, %v48_v61  ;;  %1666 = vmatmul.mubr.msk.f32.gmra.mrb[26].mxu1 %vm97_vm0, %v80_v63 }
  0x43   :  { %1620 = vmatprep.mubr.msk.f32.mxu0 %vm97_vm0, %v49_v62  ;;  %1668 = vmatprep.mubr.msk.f32.mxu1 %vm97_vm0, %v81_v0 }
  0x46   :  { %1621 = vmatmul.mubr.msk.f32.gmra.mrb[28].mxu0 %vm97_vm0, %v50_v1  ;;  %1669 = vmatmul.mubr.msk.f32.gmra.mrb[28].mxu1 %vm97_vm0, %v82_v3 }
  0x47   :  { %1623 = vmatprep.mubr.msk.f32.mxu0 %vm97_vm0, %v51_v2  ;;  %1671 = vmatprep.mubr.msk.f32.mxu1 %vm97_vm0, %v83_v4 }
  0x4a   :  { %1624 = vmatmul.mubr.msk.f32.gmra.mrb[30].mxu0 %vm97_vm0, %v52_v5  ;;  %1672 = vmatmul.mubr.msk.f32.gmra.mrb[30].mxu1 %vm97_vm0, %v84_v6 }
  0xe1   :  { %v1580_v8 = vpop.f32.mrb[0].mxu0  ;;  %v1628_v11 = vpop.f32.mrb[0].mxu1 }
  0xe2   :  { %v2023_v9 = vadd.f32 %v1580_v8, %v2020_v7  ;;  %v360_v10 = vpop.f32.mrb[1].mxu0  ;;  %v2029_v13 = vadd.f32 %v1628_v11, %v2020_v7  ;;  %v2031_v14 = vpop.f32.mrb[1].mxu1 }
  0xe3   :  { %v2026_v12 = vadd.f32 %v2020_v7, %v360_v10 }
  0xe4   :  { %v681_v15 = vsel %vm679_vm2, %v2023_v9, 0.0 }
  0xe5   :  { %v680_v16 = vsel %vm679_vm2, %v2026_v12, 0.0  ;;  %v1583_v17 = vpop.f32.mrb[2].mxu0  ;;  %v1631_v19 = vpop.f32.mrb[2].mxu1 }
  0xe6   :  { %v370_v18 = vpop.f32.mrb[3].mxu0  ;;  %v2038_v20 = vadd.f32 %v1583_v17, %v2020_v7  ;;  %v2044_v22 = vadd.f32 %v1631_v19, %v2020_v7  ;;  %v530_v23 = vpop.f32.mrb[3].mxu1  ;;  %v682_v24 = vadd.f32 %v681_v15, %v680_v16 }
  0xe7   :  { %v2041_v21 = vadd.f32 %v2020_v7, %v370_v18  ;;  %v2047_v25 = vadd.f32 %v2020_v7, %v530_v23 }
  0xe8   :  { %2945 = vst [vmem:[#allocation5_spill] sm:$0xff] %v2038_v20  ;;  %v685_v31 = vsel %vm679_vm2, %v2038_v20, 0.0 }
  0xe9   :  { %v683_v26 = vsel %vm679_vm2, %v2041_v21, 0.0  ;;  %v1586_v27 = vpop.f32.mrb[4].mxu0  ;;  %v1634_v30 = vpop.f32.mrb[4].mxu1 }
  0xea   :  { %v684_v28 = vadd.f32 %v683_v26, %v682_v24  ;;  %v380_v29 = vpop.f32.mrb[5].mxu0  ;;  %v2054_v32 = vadd.f32 %v1586_v27, %v2020_v7  ;;  %v2060_v34 = vadd.f32 %v1634_v30, %v2020_v7  ;;  %v540_v35 = vpop.f32.mrb[5].mxu1 }
  0xeb   :  { %v2057_v33 = vadd.f32 %v2020_v7, %v380_v29  ;;  %v2063_v37 = vadd.f32 %v2020_v7, %v540_v35 }
  0xec   :  { %2946 = vst [vmem:[#allocation6_spill] sm:$0xff] %v2054_v32  ;;  %v686_v36 = vadd.f32 %v685_v31, %v684_v28  ;;  %v689_v43 = vsel %vm679_vm2, %v2054_v32, 0.0 }
  0xed   :  { %2947 = vst [vmem:[#allocation7_spill] sm:$0xff] %v2057_v33  ;;  %v687_v38 = vsel %vm679_vm2, %v2057_v33, 0.0  ;;  %v1589_v39 = vpop.f32.mrb[6].mxu0  ;;  %v1637_v42 = vpop.f32.mrb[6].mxu1 }
  0xee   :  { %v688_v40 = vadd.f32 %v687_v38, %v686_v36  ;;  %v390_v41 = vpop.f32.mrb[7].mxu0  ;;  %v2070_v44 = vadd.f32 %v1589_v39, %v2020_v7  ;;  %v2076_v46 = vadd.f32 %v1637_v42, %v2020_v7  ;;  %v550_v47 = vpop.f32.mrb[7].mxu1 }
  0xef   :  { %v2073_v45 = vadd.f32 %v2020_v7, %v390_v41  ;;  %v2079_v49 = vadd.f32 %v2020_v7, %v550_v47 }
  0xf0   :  { %2948 = vst [vmem:[#allocation8_spill] sm:$0xff] %v2070_v44  ;;  %v690_v48 = vadd.f32 %v689_v43, %v688_v40  ;;  %v693_v55 = vsel %vm679_vm2, %v2070_v44, 0.0 }
  0xf1   :  { %v691_v50 = vsel %vm679_vm2, %v2073_v45, 0.0  ;;  %v1592_v51 = vpop.f32.mrb[8].mxu0  ;;  %v1640_v54 = vpop.f32.mrb[8].mxu1 }
  0xf2   :  { %v692_v52 = vadd.f32 %v691_v50, %v690_v48  ;;  %v400_v53 = vpop.f32.mrb[9].mxu0  ;;  %v2086_v56 = vadd.f32 %v1592_v51, %v2020_v7  ;;  %v2092_v58 = vadd.f32 %v1640_v54, %v2020_v7  ;;  %v560_v59 = vpop.f32.mrb[9].mxu1 }
  0xf3   :  { %v2089_v57 = vadd.f32 %v2020_v7, %v400_v53  ;;  %v2095_v61 = vadd.f32 %v2020_v7, %v560_v59 }
  0xf4   :  { %2949 = vst [vmem:[#allocation9_spill] sm:$0xff] %v2086_v56  ;;  %v694_v60 = vadd.f32 %v693_v55, %v692_v52  ;;  %v697_v3 = vsel %vm679_vm2, %v2086_v56, 0.0 }
  0xf5   :  { %2950 = vst [vmem:[#allocation10_spill] sm:$0xff] %v2089_v57  ;;  %v695_v62 = vsel %vm679_vm2, %v2089_v57, 0.0  ;;  %v1595_v63 = vpop.f32.mrb[10].mxu0  ;;  %v1643_v2 = vpop.f32.mrb[10].mxu1 }
  0xf6   :  { %v696_v0 = vadd.f32 %v695_v62, %v694_v60  ;;  %v410_v1 = vpop.f32.mrb[11].mxu0  ;;  %v2102_v4 = vadd.f32 %v1595_v63, %v2020_v7  ;;  %v2108_v6 = vadd.f32 %v1643_v2, %v2020_v7  ;;  %v570_v8 = vpop.f32.mrb[11].mxu1 }
  0xf7   :  { %v2105_v5 = vadd.f32 %v2020_v7, %v410_v1  ;;  %v2111_v11 = vadd.f32 %v2020_v7, %v570_v8 }
  0xf8   :  { %2951 = vst [vmem:[#allocation11_spill] sm:$0xff] %v2102_v4  ;;  %v698_v10 = vadd.f32 %v697_v3, %v696_v0  ;;  %v701_v23 = vsel %vm679_vm2, %v2102_v4, 0.0 }
  0xf9   :  { %2952 = vst [vmem:[#allocation12_spill] sm:$0xff] %v2105_v5  ;;  %v699_v15 = vsel %vm679_vm2, %v2105_v5, 0.0  ;;  %v1598_v16 = vpop.f32.mrb[12].mxu0  ;;  %v1646_v19 = vpop.f32.mrb[12].mxu1 }
  0xfa   :  { %v700_v17 = vadd.f32 %v699_v15, %v698_v10  ;;  %v420_v18 = vpop.f32.mrb[13].mxu0  ;;  %v2118_v24 = vadd.f32 %v1598_v16, %v2020_v7  ;;  %v2124_v27 = vadd.f32 %v1646_v19, %v2020_v7  ;;  %v580_v28 = vpop.f32.mrb[13].mxu1 }
  0xfb   :  { %v2121_v26 = vadd.f32 %v2020_v7, %v420_v18  ;;  %v2127_v30 = vadd.f32 %v2020_v7, %v580_v28 }
  0xfc   :  { %2953 = vst [vmem:[#allocation13_spill] sm:$0xff] %v2118_v24  ;;  %v702_v29 = vadd.f32 %v701_v23, %v700_v17  ;;  %v705_v40 = vsel %vm679_vm2, %v2118_v24, 0.0 }
  0xfd   :  { %2954 = vst [vmem:[#allocation14_spill] sm:$0xff] %v2121_v26  ;;  %v703_v31 = vsel %vm679_vm2, %v2121_v26, 0.0  ;;  %v1601_v35 = vpop.f32.mrb[14].mxu0  ;;  %v1649_v39 = vpop.f32.mrb[14].mxu1 }
  0xfe   :  { %v704_v36 = vadd.f32 %v703_v31, %v702_v29  ;;  %v430_v38 = vpop.f32.mrb[15].mxu0  ;;  %v2134_v41 = vadd.f32 %v1601_v35, %v2020_v7  ;;  %v2140_v43 = vadd.f32 %v1649_v39, %v2020_v7  ;;  %v590_v47 = vpop.f32.mrb[15].mxu1 }
  0xff   :  { %v2137_v42 = vadd.f32 %v2020_v7, %v430_v38  ;;  %v2143_v50 = vadd.f32 %v2020_v7, %v590_v47 }
 0x100   :  { %2955 = vst [vmem:[#allocation15_spill] sm:$0xff] %v2134_v41  ;;  %v706_v48 = vadd.f32 %v705_v40, %v704_v36  ;;  %v709_v59 = vsel %vm679_vm2, %v2134_v41, 0.0 }
 0x101   :  { %2956 = vst [vmem:[#allocation16_spill] sm:$0xff] %v2137_v42  ;;  %v707_v51 = vsel %vm679_vm2, %v2137_v42, 0.0  ;;  %v1604_v52 = vpop.f32.mrb[16].mxu0  ;;  %v1652_v55 = vpop.f32.mrb[16].mxu1 }
 0x102   :  { %v708_v53 = vadd.f32 %v707_v51, %v706_v48  ;;  %v440_v54 = vpop.f32.mrb[17].mxu0  ;;  %v2150_v60 = vadd.f32 %v1604_v52, %v2020_v7  ;;  %v2156_v63 = vadd.f32 %v1652_v55, %v2020_v7  ;;  %v600_v0 = vpop.f32.mrb[17].mxu1 }
 0x103   :  { %v2153_v62 = vadd.f32 %v2020_v7, %v440_v54  ;;  %v2159_v2 = vadd.f32 %v2020_v7, %v600_v0 }
 0x104   :  { %v710_v1 = vadd.f32 %v709_v59, %v708_v53  ;;  %v713_v17 = vsel %vm679_vm2, %v2150_v60, 0.0 }
 0x105   :  { %v711_v3 = vsel %vm679_vm2, %v2153_v62, 0.0  ;;  %v1607_v8 = vpop.f32.mrb[18].mxu0  ;;  %v1655_v16 = vpop.f32.mrb[18].mxu1 }
 0x106   :  { %v712_v10 = vadd.f32 %v711_v3, %v710_v1  ;;  %v450_v15 = vpop.f32.mrb[19].mxu0  ;;  %v2166_v18 = vadd.f32 %v1607_v8, %v2020_v7  ;;  %v2172_v23 = vadd.f32 %v1655_v16, %v2020_v7  ;;  %v610_v28 = vpop.f32.mrb[19].mxu1 }
 0x107   :  { %v2169_v19 = vadd.f32 %v2020_v7, %v450_v15  ;;  %v2175_v31 = vadd.f32 %v2020_v7, %v610_v28 }
 0x108   :  { %2957 = vst [vmem:[#allocation17_spill] sm:$0xff] %v2166_v18  ;;  %v714_v29 = vadd.f32 %v713_v17, %v712_v10  ;;  %v717_v47 = vsel %vm679_vm2, %v2166_v18, 0.0 }
 0x109   :  { %2958 = vst [vmem:[#allocation18_spill] sm:$0xff] %v2169_v19  ;;  %v715_v35 = vsel %vm679_vm2, %v2169_v19, 0.0  ;;  %v1610_v36 = vpop.f32.mrb[20].mxu0  ;;  %v1658_v40 = vpop.f32.mrb[20].mxu1 }
 0x10a   :  { %v716_v38 = vadd.f32 %v715_v35, %v714_v29  ;;  %v460_v39 = vpop.f32.mrb[21].mxu0  ;;  %v2182_v48 = vadd.f32 %v1610_v36, %v2020_v7  ;;  %v2188_v52 = vadd.f32 %v1658_v40, %v2020_v7  ;;  %v620_v53 = vpop.f32.mrb[21].mxu1 }
 0x10b   :  { %v2185_v51 = vadd.f32 %v2020_v7, %v460_v39  ;;  %v2191_v55 = vadd.f32 %v2020_v7, %v620_v53 }
 0x10c   :  { %2959 = vst [vmem:[#allocation19_spill] sm:$0xff] %v2182_v48  ;;  %v718_v54 = vadd.f32 %v717_v47, %v716_v38  ;;  %v721_v10 = vsel %vm679_vm2, %v2182_v48, 0.0 }
 0x10d   :  { %2960 = vst [vmem:[#allocation20_spill] sm:$0xff] %v2185_v51  ;;  %v719_v59 = vsel %vm679_vm2, %v2185_v51, 0.0  ;;  %v1613_v0 = vpop.f32.mrb[22].mxu0  ;;  %v1661_v8 = vpop.f32.mrb[22].mxu1 }
 0x10e   :  { %v720_v1 = vadd.f32 %v719_v59, %v718_v54  ;;  %v470_v3 = vpop.f32.mrb[23].mxu0  ;;  %v2198_v15 = vadd.f32 %v1613_v0, %v2020_v7  ;;  %v2204_v17 = vadd.f32 %v1661_v8, %v2020_v7  ;;  %v630_v28 = vpop.f32.mrb[23].mxu1 }
 0x10f   :  { %v2201_v16 = vadd.f32 %v2020_v7, %v470_v3  ;;  %v2207_v35 = vadd.f32 %v2020_v7, %v630_v28 }
 0x110   :  { %2961 = vst [vmem:[#allocation21_spill] sm:$0xff] %v2198_v15  ;;  %v722_v29 = vadd.f32 %v721_v10, %v720_v1  ;;  %v725_v53 = vsel %vm679_vm2, %v2198_v15, 0.0 }
 0x111   :  { %2962 = vst [vmem:[#allocation22_spill] sm:$0xff] %v2201_v16  ;;  %v723_v36 = vsel %vm679_vm2, %v2201_v16, 0.0  ;;  %v1616_v38 = vpop.f32.mrb[24].mxu0  ;;  %v1664_v47 = vpop.f32.mrb[24].mxu1 }
 0x112   :  { %v724_v39 = vadd.f32 %v723_v36, %v722_v29  ;;  %v480_v40 = vpop.f32.mrb[25].mxu0  ;;  %v2214_v54 = vadd.f32 %v1616_v38, %v2020_v7  ;;  %v2220_v0 = vadd.f32 %v1664_v47, %v2020_v7  ;;  %v640_v1 = vpop.f32.mrb[25].mxu1 }
 0x113   :  { %v2217_v59 = vadd.f32 %v2020_v7, %v480_v40  ;;  %v2223_v8 = vadd.f32 %v2020_v7, %v640_v1 }
 0x114   :  { %2963 = vst [vmem:[#allocation23_spill] sm:$0xff] %v2214_v54  ;;  %v726_v3 = vadd.f32 %v725_v53, %v724_v39  ;;  %v729_v38 = vsel %vm679_vm2, %v2214_v54, 0.0 }
 0x115   :  { %2964 = vst [vmem:[#allocation24_spill] sm:$0xff] %v2217_v59  ;;  %v727_v10 = vsel %vm679_vm2, %v2217_v59, 0.0  ;;  %v1619_v28 = vpop.f32.mrb[26].mxu0  ;;  %v1667_v15 = vpop.f32.mrb[26].mxu1 }
 0x116   :  { %v728_v29 = vadd.f32 %v727_v10, %v726_v3  ;;  %v490_v36 = vpop.f32.mrb[27].mxu0  ;;  %v2230_v40 = vadd.f32 %v1619_v28, %v2020_v7  ;;  %v2236_v39 = vadd.f32 %v1667_v15, %v2020_v7  ;;  %v650_v53 = vpop.f32.mrb[27].mxu1 }
 0x117   :  { %v2233_v47 = vadd.f32 %v2020_v7, %v490_v36  ;;  %v2239_v59 = vadd.f32 %v2020_v7, %v650_v53 }
 0x118   :  { %2965 = vst [vmem:[#allocation25_spill] sm:$0xff] %v2230_v40  ;;  %2967 = vst [vmem:[#allocation27_spill] sm:$0xff] %v2236_v39  ;;  %v730_v1 = vadd.f32 %v729_v38, %v728_v29  ;;  %v733_v28 = vsel %vm679_vm2, %v2230_v40, 0.0 }
 0x119   :  { %2966 = vst [vmem:[#allocation26_spill] sm:$0xff] %v2233_v47  ;;  %2968 = vst [vmem:[#allocation28_spill] sm:$0xff] %v2239_v59  ;;  %v731_v3 = vsel %vm679_vm2, %v2233_v47, 0.0  ;;  %v1622_v10 = vpop.f32.mrb[28].mxu0  ;;  %v1670_v48 = vpop.f32.mrb[28].mxu1 }
 0x11a   :  { %v732_v16 = vadd.f32 %v731_v3, %v730_v1  ;;  %v500_v54 = vpop.f32.mrb[29].mxu0  ;;  %v2246_v36 = vadd.f32 %v1622_v10, %v2020_v7  ;;  %v2252_v29 = vadd.f32 %v1670_v48, %v2020_v7  ;;  %v660_v38 = vpop.f32.mrb[29].mxu1  ;;  %v2261_v10 = vadd.f32 %v2020_v7, %v2031_v14 }
 0x11b   :  { %v2249_v15 = vadd.f32 %v2020_v7, %v500_v54  ;;  %v2255_v47 = vadd.f32 %v2020_v7, %v660_v38 }
 0x11c   :  { %2969 = vst [vmem:[#allocation29_spill] sm:$0xff] %v2246_v36  ;;  %2971 = vst [vmem:[#allocation31_spill] sm:$0xff] %v2252_v29  ;;  %v734_v53 = vadd.f32 %v733_v28, %v732_v16  ;;  %v737_v48 = vsel %vm679_vm2, %v2246_v36, 0.0 }
 0x11d   :  { %2970 = vst [vmem:[#allocation30_spill] sm:$0xff] %v2249_v15  ;;  %2972 = vst [vmem:[#allocation32_spill] sm:$0xff] %v2255_v47  ;;  %v735_v1 = vsel %vm679_vm2, %v2249_v15, 0.0  ;;  %v1625_v3 = vpop.f32.mrb[30].mxu0  ;;  %v1673_v54 = vpop.f32.mrb[30].mxu1 }
 0x11e   :  { %v736_v51 = vadd.f32 %v735_v1, %v734_v53  ;;  %v510_v40 = vpop.f32.mrb[31].mxu0  ;;  %v2266_v18 = vadd.f32 %v1625_v3, %v2020_v7  ;;  %v2272_v28 = vadd.f32 %v1673_v54, %v2020_v7  ;;  %v670_v38 = vpop.f32.mrb[31].mxu1  ;;  %v743_v3 = vsel %vm679_vm2, %v2261_v10, 0.0 }
 0x11f   :  { %v2269_v16 = vadd.f32 %v2020_v7, %v510_v40  ;;  %v2275_v1 = vadd.f32 %v2020_v7, %v670_v38  ;;  %v745_v54 = vsel %vm679_vm2, %v2029_v13, 0.0  ;;  %v749_v38 = vsel %vm679_vm2, %v2044_v22, 0.0 }
 0x120   :  { %2973 = vst [vmem:[#allocation33_spill] sm:$0xff] %v2266_v18  ;;  %2975 = vst [vmem:[#allocation35_spill] sm:$0xff] %v2272_v28  ;;  %v738_v53 = vadd.f32 %v737_v48, %v736_v51  ;;  %v741_v36 = vsel %vm679_vm2, %v2266_v18, 0.0  ;;  %v747_v51 = vsel %vm679_vm2, %v2047_v25, 0.0 }
 0x121   :  { %2974 = vst [vmem:[#allocation34_spill] sm:$0xff] %v2269_v16  ;;  %v739_v14 = vsel %vm679_vm2, %v2269_v16, 0.0 }
 0x122   :  { %v740_v15 = vadd.f32 %v739_v14, %v738_v53  ;;  %v751_v53 = vsel %vm679_vm2, %v2063_v37, 0.0 }
 0x124   :  { %v742_v40 = vadd.f32 %v741_v36, %v740_v15  ;;  %v753_v36 = vsel %vm679_vm2, %v2060_v34, 0.0  ;;  %v755_v15 = vsel %vm679_vm2, %v2079_v49, 0.0 }
 0x126   :  { %v744_v19 = vadd.f32 %v743_v3, %v742_v40 }
 0x128   :  { %v746_v7 = vadd.f32 %v745_v54, %v744_v19  ;;  %v757_v19 = vsel %vm679_vm2, %v2076_v46, 0.0  ;;  %v759_v54 = vsel %vm679_vm2, %v2095_v61, 0.0 }
 0x12a   :  { %v748_v48 = vadd.f32 %v747_v51, %v746_v7 }
 0x12c   :  { %v750_v14 = vadd.f32 %v749_v38, %v748_v48  ;;  %v761_v48 = vsel %vm679_vm2, %v2092_v58, 0.0  ;;  %v763_v38 = vsel %vm679_vm2, %v2111_v11, 0.0 }
 0x12e   :  { %v752_v18 = vadd.f32 %v751_v53, %v750_v14 }
 0x130   :  { %v754_v3 = vadd.f32 %v753_v36, %v752_v18  ;;  %v765_v18 = vsel %vm679_vm2, %v2108_v6, 0.0  ;;  %v767_v36 = vsel %vm679_vm2, %v2127_v30, 0.0 }
 0x132   :  { %v756_v40 = vadd.f32 %v755_v15, %v754_v3 }
 0x134   :  { %v758_v51 = vadd.f32 %v757_v19, %v756_v40  ;;  %v769_v40 = vsel %vm679_vm2, %v2124_v27, 0.0  ;;  %v771_v19 = vsel %vm679_vm2, %v2143_v50, 0.0 }
 0x136   :  { %v760_v7 = vadd.f32 %v759_v54, %v758_v51 }
 0x138   :  { %v762_v53 = vadd.f32 %v761_v48, %v760_v7  ;;  %v773_v7 = vsel %vm679_vm2, %v2140_v43, 0.0  ;;  %v775_v48 = vsel %vm679_vm2, %v2159_v2, 0.0 }
 0x13a   :  { %v764_v14 = vadd.f32 %v763_v38, %v762_v53 }
 0x13c   :  { %v766_v15 = vadd.f32 %v765_v18, %v764_v14  ;;  %v777_v14 = vsel %vm679_vm2, %v2156_v63, 0.0  ;;  %v779_v18 = vsel %vm679_vm2, %v2175_v31, 0.0 }
 0x13e   :  { %v768_v3 = vadd.f32 %v767_v36, %v766_v15 }
 0x140   :  { %v770_v54 = vadd.f32 %v769_v40, %v768_v3  ;;  %v781_v3 = vsel %vm679_vm2, %v2172_v23, 0.0  ;;  %v783_v40 = vsel %vm679_vm2, %v2191_v55, 0.0 }
 0x142   :  { %v772_v51 = vadd.f32 %v771_v19, %v770_v54 }
 0x144   :  { %v774_v38 = vadd.f32 %v773_v7, %v772_v51  ;;  %v785_v51 = vsel %vm679_vm2, %v2188_v52, 0.0  ;;  %v787_v7 = vsel %vm679_vm2, %v2207_v35, 0.0 }
 0x146   :  { %v776_v53 = vadd.f32 %v775_v48, %v774_v38 }
 0x148   :  { %v778_v36 = vadd.f32 %v777_v14, %v776_v53  ;;  %v789_v53 = vsel %vm679_vm2, %v2204_v17, 0.0  ;;  %v791_v14 = vsel %vm679_vm2, %v2223_v8, 0.0 }
 0x14a   :  { %v780_v15 = vadd.f32 %v779_v18, %v778_v36 }
 0x14c   :  { %v782_v19 = vadd.f32 %v781_v3, %v780_v15  ;;  %v793_v15 = vsel %vm679_vm2, %v2220_v0, 0.0  ;;  %v795_v3 = vsel %vm679_vm2, %v2239_v59, 0.0 }
 0x14e   :  { %v784_v54 = vadd.f32 %v783_v40, %v782_v19 }
 0x150   :  { %v786_v48 = vadd.f32 %v785_v51, %v784_v54  ;;  %v797_v54 = vsel %vm679_vm2, %v2236_v39, 0.0 }
 0x152   :  { %v788_v38 = vadd.f32 %v787_v7, %v786_v48  ;;  %v799_v7 = vsel %vm679_vm2, %v2255_v47, 0.0 }
 0x154   :  { %v790_v18 = vadd.f32 %v789_v53, %v788_v38  ;;  %v801_v38 = vsel %vm679_vm2, %v2252_v29, 0.0 }
 0x156   :  { %v792_v36 = vadd.f32 %v791_v14, %v790_v18  ;;  %v803_v14 = vsel %vm679_vm2, %v2275_v1, 0.0 }
 0x158   :  { %v794_v40 = vadd.f32 %v793_v15, %v792_v36  ;;  %v805_v36 = vsel %vm679_vm2, %v2272_v28, 0.0 }
 0x15a   :  { %v796_v19 = vadd.f32 %v795_v3, %v794_v40 }
 0x15c   :  { %v798_v51 = vadd.f32 %v797_v54, %v796_v19 }
 0x15e   :  { %v800_v48 = vadd.f32 %v799_v7, %v798_v51 }
 0x160   :  { %v802_v53 = vadd.f32 %v801_v38, %v800_v48 }
 0x162   :  { %v804_v18 = vadd.f32 %v803_v14, %v802_v53 }
 0x164   :  { %v806_v15 = vadd.f32 %v805_v36, %v804_v18 }
 0x166   :  { %v807_v3 = vrot.slane %v806_v15, 4 }
 0x168   :  { %v808_v40 = vadd.f32 %v807_v3, %v806_v15 }
 0x16a   :  { %v809_v39 = vrot.slane %v808_v40, 2 }
 0x16c   :  { %v810_v19 = vadd.f32 %v809_v39, %v808_v40 }
 0x16e   :  { %v811_v54 = vrot.slane %v810_v19, 1 }
 0x170   :  { %v812_v59 = vadd.f32 %v811_v54, %v810_v19 }
 0x172   :  { %v2345_v47 = vmul.f32 0.001953125, %v812_v59 }
 0x174   :  { %v814_v51 = vsub.f32 %v2026_v12, %v2345_v47  ;;  %v815_v7 = vsub.f32 %v2023_v9, %v2345_v47  ;;  %v816_v48 = vsub.f32 %v2041_v21, %v2345_v47  ;;  %v817_v38 = vsub.f32 %v2038_v20, %v2345_v47 }
 0x175   :  { %v818_v39 = vsub.f32 %v2057_v33, %v2345_v47  ;;  %v819_v59 = vsub.f32 %v2054_v32, %v2345_v47  ;;  %v820_v19 = vsub.f32 %v2073_v45, %v2345_v47  ;;  %v821_v33 = vsub.f32 %v2070_v44, %v2345_v47 }
 0x176   :  { %v878_v53 = vmul.f32 %v814_v51, %v814_v51  ;;  %v879_v14 = vmul.f32 %v815_v7, %v815_v7  ;;  %v880_v18 = vmul.f32 %v816_v48, %v816_v48  ;;  %v881_v36 = vmul.f32 %v817_v38, %v817_v38 }
 0x177   :  { %v882_v54 = vmul.f32 %v818_v39, %v818_v39  ;;  %v883_v48 = vmul.f32 %v819_v59, %v819_v59  ;;  %v822_v38 = vsub.f32 %v2089_v57, %v2345_v47  ;;  %v823_v39 = vsub.f32 %v2086_v56, %v2345_v47 }
 0x178   :  { %v942_v15 = vsel %vm679_vm2, %v878_v53, 0.0  ;;  %v943_v3 = vsel %vm679_vm2, %v879_v14, 0.0  ;;  %v945_v51 = vsel %vm679_vm2, %v880_v18, 0.0  ;;  %v947_v20 = vsel %vm679_vm2, %v881_v36, 0.0 }
 0x179   :  { %v944_v40 = vadd.f32 %v943_v3, %v942_v15  ;;  %v884_v53 = vmul.f32 %v820_v19, %v820_v19  ;;  %v949_v14 = vsel %vm679_vm2, %v882_v54, 0.0  ;;  %v885_v3 = vmul.f32 %v821_v33, %v821_v33 }
 0x17a   :  { %v951_v18 = vsel %vm679_vm2, %v883_v48, 0.0  ;;  %v824_v59 = vsub.f32 %v2105_v5, %v2345_v47  ;;  %v825_v19 = vsub.f32 %v2102_v4, %v2345_v47  ;;  %v826_v33 = vsub.f32 %v2121_v26, %v2345_v47 }
 0x17b   :  { %v946_v7 = vadd.f32 %v945_v51, %v944_v40  ;;  %v886_v51 = vmul.f32 %v822_v38, %v822_v38  ;;  %v827_v38 = vsub.f32 %v2118_v24, %v2345_v47 }
 0x17d   :  { %v948_v32 = vadd.f32 %v947_v20, %v946_v7  ;;  %v953_v20 = vsel %vm679_vm2, %v884_v53, 0.0  ;;  %v887_v7 = vmul.f32 %v823_v39, %v823_v39  ;;  %v957_v48 = vsel %vm679_vm2, %v886_v51, 0.0 }
 0x17e   :  { %v828_v39 = vsub.f32 %v2137_v42, %v2345_v47 }
 0x17f   :  { %v950_v15 = vadd.f32 %v949_v14, %v948_v32  ;;  %v955_v32 = vsel %vm679_vm2, %v885_v3, 0.0  ;;  %v888_v14 = vmul.f32 %v824_v59, %v824_v59  ;;  %v959_v53 = vsel %vm679_vm2, %v887_v7, 0.0 }
 0x180   :  { %v829_v59 = vsub.f32 %v2134_v41, %v2345_v47 }
 0x181   :  { %v952_v40 = vadd.f32 %v951_v18, %v950_v15  ;;  %v889_v18 = vmul.f32 %v825_v19, %v825_v19  ;;  %v961_v3 = vsel %vm679_vm2, %v888_v14, 0.0  ;;  %v830_v19 = vsub.f32 %v2153_v62, %v2345_v47 }
 0x183   :  { %v954_v36 = vadd.f32 %v953_v20, %v952_v40  ;;  %v890_v20 = vmul.f32 %v826_v33, %v826_v33  ;;  %v963_v51 = vsel %vm679_vm2, %v889_v18, 0.0  ;;  %v831_v33 = vsub.f32 %v2150_v60, %v2345_v47 }
 0x184   :  { %v894_v41 = vmul.f32 %v830_v19, %v830_v19 }
 0x185   :  { %v956_v54 = vadd.f32 %v955_v32, %v954_v36  ;;  %v891_v32 = vmul.f32 %v827_v38, %v827_v38  ;;  %v965_v7 = vsel %vm679_vm2, %v890_v20, 0.0  ;;  %v895_v42 = vmul.f32 %v831_v33, %v831_v33 }
 0x187   :  { %v958_v15 = vadd.f32 %v957_v48, %v956_v54  ;;  %v892_v48 = vmul.f32 %v828_v39, %v828_v39  ;;  %v967_v14 = vsel %vm679_vm2, %v891_v32, 0.0  ;;  %v973_v32 = vsel %vm679_vm2, %v894_v41, 0.0 }
 0x189   :  { %v960_v40 = vadd.f32 %v959_v53, %v958_v15  ;;  %v893_v53 = vmul.f32 %v829_v59, %v829_v59  ;;  %v969_v18 = vsel %vm679_vm2, %v892_v48, 0.0  ;;  %v975_v48 = vsel %vm679_vm2, %v895_v42, 0.0 }
 0x18b   :  { %v962_v36 = vadd.f32 %v961_v3, %v960_v40  ;;  %v2976_v3 = vld [vmem:[#allocation18_spill] sm:$0xff]  ;;  %v971_v20 = vsel %vm679_vm2, %v893_v53, 0.0 }
 0x18c   :  { %v832_v38 = vsub.f32 %v2976_v3, %v2345_v47 }
 0x18d   :  { %v964_v54 = vadd.f32 %v963_v51, %v962_v36  ;;  %v2977_v51 = vld [vmem:[#allocation17_spill] sm:$0xff] }
 0x18e   :  { %v833_v39 = vsub.f32 %v2977_v51, %v2345_v47  ;;  %v896_v24 = vmul.f32 %v832_v38, %v832_v38 }
 0x18f   :  { %v966_v15 = vadd.f32 %v965_v7, %v964_v54  ;;  %v2978_v7 = vld [vmem:[#allocation20_spill] sm:$0xff] }
 0x190   :  { %v834_v59 = vsub.f32 %v2978_v7, %v2345_v47  ;;  %v897_v26 = vmul.f32 %v833_v39, %v833_v39  ;;  %v977_v53 = vsel %vm679_vm2, %v896_v24, 0.0 }
 0x191   :  { %v968_v40 = vadd.f32 %v967_v14, %v966_v15  ;;  %v2979_v14 = vld [vmem:[#allocation19_spill] sm:$0xff] }
 0x192   :  { %v835_v19 = vsub.f32 %v2979_v14, %v2345_v47  ;;  %v898_v4 = vmul.f32 %v834_v59, %v834_v59  ;;  %v979_v41 = vsel %vm679_vm2, %v897_v26, 0.0 }
 0x193   :  { %v970_v36 = vadd.f32 %v969_v18, %v968_v40  ;;  %v2980_v18 = vld [vmem:[#allocation22_spill] sm:$0xff] }
 0x194   :  { %v836_v33 = vsub.f32 %v2980_v18, %v2345_v47  ;;  %v899_v5 = vmul.f32 %v835_v19, %v835_v19  ;;  %v981_v42 = vsel %vm679_vm2, %v898_v4, 0.0 }
 0x195   :  { %v972_v54 = vadd.f32 %v971_v20, %v970_v36  ;;  %v2981_v20 = vld [vmem:[#allocation21_spill] sm:$0xff] }
 0x196   :  { %v837_v38 = vsub.f32 %v2981_v20, %v2345_v47  ;;  %v900_v56 = vmul.f32 %v836_v33, %v836_v33  ;;  %v983_v24 = vsel %vm679_vm2, %v899_v5, 0.0 }
 0x197   :  { %v974_v15 = vadd.f32 %v973_v32, %v972_v54  ;;  %v2982_v32 = vld [vmem:[#allocation24_spill] sm:$0xff] }
 0x198   :  { %v838_v39 = vsub.f32 %v2982_v32, %v2345_v47  ;;  %v901_v57 = vmul.f32 %v837_v38, %v837_v38  ;;  %v985_v26 = vsel %vm679_vm2, %v900_v56, 0.0 }
 0x199   :  { %v976_v40 = vadd.f32 %v975_v48, %v974_v15  ;;  %v2983_v48 = vld [vmem:[#allocation23_spill] sm:$0xff] }
 0x19a   :  { %v839_v59 = vsub.f32 %v2983_v48, %v2345_v47  ;;  %v902_v44 = vmul.f32 %v838_v39, %v838_v39  ;;  %v987_v4 = vsel %vm679_vm2, %v901_v57, 0.0 }
 0x19b   :  { %v978_v36 = vadd.f32 %v977_v53, %v976_v40  ;;  %v2984_v53 = vld [vmem:[#allocation26_spill] sm:$0xff] }
 0x19c   :  { %v840_v19 = vsub.f32 %v2984_v53, %v2345_v47  ;;  %v903_v32 = vmul.f32 %v839_v59, %v839_v59  ;;  %v989_v5 = vsel %vm679_vm2, %v902_v44, 0.0  ;;  %v844_v59 = vsub.f32 %v2269_v16, %v2345_v47 }
 0x19d   :  { %v980_v54 = vadd.f32 %v979_v41, %v978_v36  ;;  %v2985_v41 = vld [vmem:[#allocation25_spill] sm:$0xff] }
 0x19e   :  { %v841_v33 = vsub.f32 %v2985_v41, %v2345_v47  ;;  %v904_v48 = vmul.f32 %v840_v19, %v840_v19  ;;  %v991_v56 = vsel %vm679_vm2, %v903_v32, 0.0 }
 0x19f   :  { %v982_v15 = vadd.f32 %v981_v42, %v980_v54  ;;  %v2986_v42 = vld [vmem:[#allocation30_spill] sm:$0xff] }
 0x1a0   :  { %v842_v38 = vsub.f32 %v2986_v42, %v2345_v47  ;;  %v905_v53 = vmul.f32 %v841_v33, %v841_v33  ;;  %v993_v57 = vsel %vm679_vm2, %v904_v48, 0.0  ;;  %v846_v33 = vsub.f32 %v2261_v10, %v2345_v47 }
 0x1a1   :  { %v984_v40 = vadd.f32 %v983_v24, %v982_v15  ;;  %v2987_v24 = vld [vmem:[#allocation29_spill] sm:$0xff] }
 0x1a2   :  { %v843_v39 = vsub.f32 %v2987_v24, %v2345_v47  ;;  %v995_v44 = vsel %vm679_vm2, %v905_v53, 0.0 }
 0x1a3   :  { %v986_v36 = vadd.f32 %v985_v26, %v984_v40  ;;  %v906_v26 = vmul.f32 %v842_v38, %v842_v38  ;;  %v847_v38 = vsub.f32 %v2029_v13, %v2345_v47 }
 0x1a4   :  { %v907_v42 = vmul.f32 %v843_v39, %v843_v39  ;;  %v848_v39 = vsub.f32 %v2047_v25, %v2345_v47 }
 0x1a5   :  { %v988_v54 = vadd.f32 %v987_v4, %v986_v36  ;;  %v2988_v4 = vld [vmem:[#allocation33_spill] sm:$0xff]  ;;  %v997_v32 = vsel %vm679_vm2, %v906_v26, 0.0 }
 0x1a6   :  { %v845_v19 = vsub.f32 %v2988_v4, %v2345_v47  ;;  %v999_v48 = vsel %vm679_vm2, %v907_v42, 0.0 }
 0x1a7   :  { %v990_v15 = vadd.f32 %v989_v5, %v988_v54  ;;  %v908_v5 = vmul.f32 %v844_v59, %v844_v59  ;;  %v849_v59 = vsub.f32 %v2044_v22, %v2345_v47 }
 0x1a9   :  { %v992_v40 = vadd.f32 %v991_v56, %v990_v15  ;;  %v909_v56 = vmul.f32 %v845_v19, %v845_v19  ;;  %v1001_v53 = vsel %vm679_vm2, %v908_v5, 0.0  ;;  %v850_v19 = vsub.f32 %v2063_v37, %v2345_v47 }
 0x1ab   :  { %v994_v36 = vadd.f32 %v993_v57, %v992_v40  ;;  %v910_v57 = vmul.f32 %v846_v33, %v846_v33  ;;  %v1003_v26 = vsel %vm679_vm2, %v909_v56, 0.0  ;;  %v851_v33 = vsub.f32 %v2060_v34, %v2345_v47 }
 0x1ad   :  { %v996_v54 = vadd.f32 %v995_v44, %v994_v36  ;;  %v911_v44 = vmul.f32 %v847_v38, %v847_v38  ;;  %v1005_v42 = vsel %vm679_vm2, %v910_v57, 0.0  ;;  %v852_v38 = vsub.f32 %v2079_v49, %v2345_v47 }
 0x1af   :  { %v998_v15 = vadd.f32 %v997_v32, %v996_v54  ;;  %v912_v32 = vmul.f32 %v848_v39, %v848_v39  ;;  %v1007_v5 = vsel %vm679_vm2, %v911_v44, 0.0  ;;  %v853_v39 = vsub.f32 %v2076_v46, %v2345_v47 }
 0x1b1   :  { %v1000_v40 = vadd.f32 %v999_v48, %v998_v15  ;;  %v913_v48 = vmul.f32 %v849_v59, %v849_v59  ;;  %v1009_v56 = vsel %vm679_vm2, %v912_v32, 0.0  ;;  %v854_v59 = vsub.f32 %v2095_v61, %v2345_v47 }
 0x1b3   :  { %v1002_v36 = vadd.f32 %v1001_v53, %v1000_v40  ;;  %v914_v53 = vmul.f32 %v850_v19, %v850_v19  ;;  %v1011_v57 = vsel %vm679_vm2, %v913_v48, 0.0  ;;  %v855_v19 = vsub.f32 %v2092_v58, %v2345_v47 }
 0x1b5   :  { %v1004_v54 = vadd.f32 %v1003_v26, %v1002_v36  ;;  %v915_v26 = vmul.f32 %v851_v33, %v851_v33  ;;  %v1013_v44 = vsel %vm679_vm2, %v914_v53, 0.0  ;;  %v856_v33 = vsub.f32 %v2111_v11, %v2345_v47 }
 0x1b7   :  { %v1006_v15 = vadd.f32 %v1005_v42, %v1004_v54  ;;  %v916_v42 = vmul.f32 %v852_v38, %v852_v38  ;;  %v1015_v32 = vsel %vm679_vm2, %v915_v26, 0.0  ;;  %v857_v38 = vsub.f32 %v2108_v6, %v2345_v47 }
 0x1b9   :  { %v1008_v40 = vadd.f32 %v1007_v5, %v1006_v15  ;;  %v917_v5 = vmul.f32 %v853_v39, %v853_v39  ;;  %v1017_v48 = vsel %vm679_vm2, %v916_v42, 0.0  ;;  %v858_v39 = vsub.f32 %v2127_v30, %v2345_v47 }
 0x1bb   :  { %v1010_v36 = vadd.f32 %v1009_v56, %v1008_v40  ;;  %v918_v56 = vmul.f32 %v854_v59, %v854_v59  ;;  %v1019_v53 = vsel %vm679_vm2, %v917_v5, 0.0  ;;  %v859_v59 = vsub.f32 %v2124_v27, %v2345_v47 }
 0x1bd   :  { %v1012_v54 = vadd.f32 %v1011_v57, %v1010_v36  ;;  %v919_v57 = vmul.f32 %v855_v19, %v855_v19  ;;  %v1021_v26 = vsel %vm679_vm2, %v918_v56, 0.0  ;;  %v860_v19 = vsub.f32 %v2143_v50, %v2345_v47 }
 0x1bf   :  { %v1014_v15 = vadd.f32 %v1013_v44, %v1012_v54  ;;  %v920_v44 = vmul.f32 %v856_v33, %v856_v33  ;;  %v1023_v42 = vsel %vm679_vm2, %v919_v57, 0.0  ;;  %v861_v33 = vsub.f32 %v2140_v43, %v2345_v47 }
 0x1c1   :  { %v1016_v40 = vadd.f32 %v1015_v32, %v1014_v15  ;;  %v921_v32 = vmul.f32 %v857_v38, %v857_v38  ;;  %v1025_v5 = vsel %vm679_vm2, %v920_v44, 0.0  ;;  %v862_v38 = vsub.f32 %v2159_v2, %v2345_v47 }
 0x1c3   :  { %v1018_v36 = vadd.f32 %v1017_v48, %v1016_v40  ;;  %v922_v48 = vmul.f32 %v858_v39, %v858_v39  ;;  %v1027_v56 = vsel %vm679_vm2, %v921_v32, 0.0  ;;  %v863_v39 = vsub.f32 %v2156_v63, %v2345_v47 }
 0x1c5   :  { %v1020_v54 = vadd.f32 %v1019_v53, %v1018_v36  ;;  %v923_v53 = vmul.f32 %v859_v59, %v859_v59  ;;  %v1029_v57 = vsel %vm679_vm2, %v922_v48, 0.0  ;;  %v864_v59 = vsub.f32 %v2175_v31, %v2345_v47 }
 0x1c7   :  { %v1022_v15 = vadd.f32 %v1021_v26, %v1020_v54  ;;  %v924_v26 = vmul.f32 %v860_v19, %v860_v19  ;;  %v1031_v44 = vsel %vm679_vm2, %v923_v53, 0.0  ;;  %v865_v19 = vsub.f32 %v2172_v23, %v2345_v47 }
 0x1c9   :  { %v1024_v40 = vadd.f32 %v1023_v42, %v1022_v15  ;;  %v925_v42 = vmul.f32 %v861_v33, %v861_v33  ;;  %v1033_v32 = vsel %vm679_vm2, %v924_v26, 0.0  ;;  %v866_v33 = vsub.f32 %v2191_v55, %v2345_v47 }
 0x1cb   :  { %v1026_v36 = vadd.f32 %v1025_v5, %v1024_v40  ;;  %v926_v5 = vmul.f32 %v862_v38, %v862_v38  ;;  %v1035_v48 = vsel %vm679_vm2, %v925_v42, 0.0  ;;  %v867_v38 = vsub.f32 %v2188_v52, %v2345_v47 }
 0x1cd   :  { %v1028_v54 = vadd.f32 %v1027_v56, %v1026_v36  ;;  %v927_v56 = vmul.f32 %v863_v39, %v863_v39  ;;  %v1037_v53 = vsel %vm679_vm2, %v926_v5, 0.0  ;;  %v868_v39 = vsub.f32 %v2207_v35, %v2345_v47 }
 0x1cf   :  { %v1030_v15 = vadd.f32 %v1029_v57, %v1028_v54  ;;  %v928_v57 = vmul.f32 %v864_v59, %v864_v59  ;;  %v1039_v26 = vsel %vm679_vm2, %v927_v56, 0.0  ;;  %v869_v59 = vsub.f32 %v2204_v17, %v2345_v47 }
 0x1d1   :  { %v1032_v40 = vadd.f32 %v1031_v44, %v1030_v15  ;;  %v929_v44 = vmul.f32 %v865_v19, %v865_v19  ;;  %v1041_v42 = vsel %vm679_vm2, %v928_v57, 0.0  ;;  %v870_v19 = vsub.f32 %v2223_v8, %v2345_v47 }
 0x1d3   :  { %v1034_v36 = vadd.f32 %v1033_v32, %v1032_v40  ;;  %v930_v32 = vmul.f32 %v866_v33, %v866_v33  ;;  %v1043_v5 = vsel %vm679_vm2, %v929_v44, 0.0  ;;  %v871_v33 = vsub.f32 %v2220_v0, %v2345_v47 }
 0x1d4   :  { %v934_v4 = vmul.f32 %v870_v19, %v870_v19  ;;  %v875_v19 = vsub.f32 %v2252_v29, %v2345_v47 }
 0x1d5   :  { %v1036_v54 = vadd.f32 %v1035_v48, %v1034_v36  ;;  %v931_v48 = vmul.f32 %v867_v38, %v867_v38  ;;  %v1045_v56 = vsel %vm679_vm2, %v930_v32, 0.0  ;;  %v935_v16 = vmul.f32 %v871_v33, %v871_v33 }
 0x1d6   :  { %v876_v33 = vsub.f32 %v2275_v1, %v2345_v47 }
 0x1d7   :  { %v1038_v15 = vadd.f32 %v1037_v53, %v1036_v54  ;;  %v932_v53 = vmul.f32 %v868_v39, %v868_v39  ;;  %v1047_v57 = vsel %vm679_vm2, %v931_v48, 0.0  ;;  %v1053_v48 = vsel %vm679_vm2, %v934_v4, 0.0 }
 0x1d9   :  { %v1040_v40 = vadd.f32 %v1039_v26, %v1038_v15  ;;  %v933_v26 = vmul.f32 %v869_v59, %v869_v59  ;;  %v1049_v44 = vsel %vm679_vm2, %v932_v53, 0.0  ;;  %v1055_v53 = vsel %vm679_vm2, %v935_v16, 0.0 }
 0x1db   :  { %v1042_v36 = vadd.f32 %v1041_v42, %v1040_v40  ;;  %v2989_v42 = vld [vmem:[#allocation28_spill] sm:$0xff]  ;;  %v1051_v32 = vsel %vm679_vm2, %v933_v26, 0.0 }
 0x1dc   :  { %v872_v38 = vsub.f32 %v2989_v42, %v2345_v47 }
 0x1dd   :  { %v1044_v54 = vadd.f32 %v1043_v5, %v1042_v36  ;;  %v2990_v5 = vld [vmem:[#allocation27_spill] sm:$0xff] }
 0x1de   :  { %v873_v39 = vsub.f32 %v2990_v5, %v2345_v47  ;;  %v936_v24 = vmul.f32 %v872_v38, %v872_v38  ;;  %v877_v38 = vsub.f32 %v2272_v28, %v2345_v47 }
 0x1df   :  { %v1046_v15 = vadd.f32 %v1045_v56, %v1044_v54  ;;  %v2991_v56 = vld [vmem:[#allocation32_spill] sm:$0xff] }
 0x1e0   :  { %v874_v59 = vsub.f32 %v2991_v56, %v2345_v47  ;;  %v1057_v26 = vsel %vm679_vm2, %v936_v24, 0.0  ;;  %v941_v16 = vmul.f32 %v877_v38, %v877_v38 }
 0x1e1   :  { %v1048_v40 = vadd.f32 %v1047_v57, %v1046_v15  ;;  %v937_v57 = vmul.f32 %v873_v39, %v873_v39 }
 0x1e2   :  { %v1067_v24 = vsel %vm679_vm2, %v941_v16, 0.0 }
 0x1e3   :  { %v1050_v36 = vadd.f32 %v1049_v44, %v1048_v40  ;;  %v938_v44 = vmul.f32 %v874_v59, %v874_v59  ;;  %v1059_v4 = vsel %vm679_vm2, %v937_v57, 0.0 }
 0x1e5   :  { %v1052_v54 = vadd.f32 %v1051_v32, %v1050_v36  ;;  %v939_v32 = vmul.f32 %v875_v19, %v875_v19  ;;  %v1061_v39 = vsel %vm679_vm2, %v938_v44, 0.0  ;;  %v1084_v44 = vlaneseq }
 0x1e7   :  { %v1054_v15 = vadd.f32 %v1053_v48, %v1052_v54  ;;  %v940_v48 = vmul.f32 %v876_v33, %v876_v33 }
 0x1e9   :  { %v1056_v40 = vadd.f32 %v1055_v53, %v1054_v15  ;;  %v1063_v15 = vsel %vm679_vm2, %v939_v32, 0.0  ;;  %v1065_v59 = vsel %vm679_vm2, %v940_v48, 0.0 }
 0x1eb   :  { %v1058_v36 = vadd.f32 %v1057_v26, %v1056_v40 }
 0x1ed   :  { %v1060_v54 = vadd.f32 %v1059_v4, %v1058_v36 }
 0x1ef   :  { %v1062_v41 = vadd.f32 %v1061_v39, %v1060_v54  ;;  %v1085_v54 = vshrl.u32 %v1084_v44, 7 }
 0x1f1   :  { %v1064_v53 = vadd.f32 %v1063_v15, %v1062_v41  ;;  %v1076_v41 = vld [vmem:[%s2895_s3] sm:$0x1]  ;;  %s1715_s3 = smov [#allocation2]  }
 0x1f3   :  { %v1066_v29 = vadd.f32 %v1065_v59, %v1064_v53 }
 0x1f5   :  { %v1068_v40 = vadd.f32 %v1067_v24, %v1066_v29  ;;  %v1080_v29 = vld [vmem:[%s2896_s4] sm:$0x1]  ;;  %s1425_s4 = sshll.u32 %s1715_s3, 4  ;;  %s1426_s4 = int_to_ptr.vmem [resolvable:$true] %s1425_s4 }
 0x1f6   :  { %s1691_s30 = scalar_lea.vmem %s1426_s4, 512  ;;  %p1696_p1 = scmp.lt.s32.totalorder %s1426_s4, %s1426_s4 }
 0x1f7   :  { %v1069_v26 = vrot.slane %v1068_v40, 4  ;;  %p1692_p0 = scmp.ne.s32.totalorder %s1426_s4, %s1691_s30  ;;  %p1697_p2 = scmp.lt.s32.totalorder %s1691_s30, %s1691_s30 }
 0x1f9   :  { %v1070_v28 = vadd.f32 %v1069_v26, %v1068_v40  ;;  %p1698_p3 = por %p1697_p2, %p1696_p1 }
 0x1fb   :  { %v1071_v19 = vrot.slane %v1070_v28, 2  ;;  %p1699_p4 = pnand %p1698_p3, %p1692_p0 }
 0x1fd   :  { %v1072_v56 = vadd.f32 %v1071_v19, %v1070_v28  ;;  %v1086_v28 = vsub.s32 0, %v1085_v54 }
 0x1ff   :  { %v1073_v57 = vrot.slane %v1072_v56, 1 }
 0x201   :  { %v1074_v36 = vadd.f32 %v1073_v57, %v1072_v56 }
 0x203   :  { %v1075_v33 = vmul.f32 0.001953125, %v1074_v36 }
 0x205   :  { %v1077_v4 = vadd.f32 1e-05, %v1075_v33 }
 0x207   :  { %1689 = vrsqrt.f32 %v1077_v4 }
 0x211   :  { %v1690_v38 = vpop.eup %1689 }
 0x212   :  { %v1079_v32 = vmul.f32 %v1690_v38, %v1076_v41  ;;  %v2992_v41 = vld [vmem:[#allocation5_spill] sm:$0xff] }
 0x214   :  { %v1081_v48 = vmul.f32 %v1079_v32, %v2345_v47  ;;  %v2546_v56 = vrot.slane %v1079_v32, %v1086_v28 }
 0x216   :  { %v1082_v39 = vsub.f32 %v1080_v29, %v1081_v48  ;;  %v1105_v15 = vmul.f32 %v2546_v56, %v2153_v62  ;;  %v1089_v53 = vmul.f32 %v2546_v56, %v2026_v12  ;;  %v1106_v24 = vmul.f32 %v2546_v56, %v2150_v60 }
 0x217   :  { %v1090_v40 = vmul.f32 %v2546_v56, %v2023_v9  ;;  %v1107_v12 = vmul.f32 %v2546_v56, %v2976_v3  ;;  %v1091_v62 = vmul.f32 %v2546_v56, %v2041_v21  ;;  %v1108_v44 = vmul.f32 %v2546_v56, %v2977_v51 }
 0x218   :  { %v2548_v16 = vrot.slane %v1082_v39, %v1086_v28  ;;  %v1092_v38 = vmul.f32 %v2546_v56, %v2992_v41  ;;  %v2574_v3 = vmul.f32 %v2546_v56, %v2275_v1  ;;  %v1122_v21 = vmul.f32 %v2546_v56, %v2029_v13 }
 0x219   :  { %v1123_v32 = vmul.f32 %v2546_v56, %v2047_v25  ;;  %v2582_v54 = vmul.f32 %v2546_v56, %v2044_v22  ;;  %v2588_v1 = vmul.f32 %v2546_v56, %v2063_v37  ;;  %v2592_v13 = vmul.f32 %v2546_v56, %v2060_v34 }
 0x21a   :  { %v1175_v59 = vadd.f32 %v2548_v16, %v1105_v15  ;;  %v1159_v47 = vadd.f32 %v2548_v16, %v1089_v53  ;;  %v1176_v57 = vadd.f32 %v2548_v16, %v1106_v24  ;;  %v1160_v36 = vadd.f32 %v2548_v16, %v1090_v40  ;;  %v2993_v15 = vld [vmem:[#allocation7_spill] sm:$0xff] }
 0x21b   :  { %v1177_v60 = vadd.f32 %v2548_v16, %v1107_v12  ;;  %v1161_v9 = vadd.f32 %v2548_v16, %v1091_v62  ;;  %v1178_v51 = vadd.f32 %v2548_v16, %v1108_v44  ;;  %v1162_v28 = vadd.f32 %v2548_v16, %v1092_v38 }
 0x21c   :  { %v1239_v26 = vmax.f32 %v1175_v59, 0.0  ;;  %v1223_v19 = vmax.f32 %v1159_v47, 0.0  ;;  %v1240_v33 = vmax.f32 %v1176_v57, 0.0  ;;  %v1224_v4 = vmax.f32 %v1160_v36, 0.0 }
 0x21d   :  { %v1241_v48 = vmax.f32 %v1177_v60, 0.0  ;;  %v1225_v29 = vmax.f32 %v1161_v9, 0.0  ;;  %v2596_v25 = vmul.f32 %v2546_v56, %v2079_v49  ;;  %v2600_v22 = vmul.f32 %v2546_v56, %v2076_v46  ;;  %v2995_v60 = vld [vmem:[#allocation8_spill] sm:$0xff] }
 0x21e   :  { %1319 = vxpose.xlu1.b32.start [1/16] (narrow) %v1239_v26, 8  ;;  %1287 = vxpose.xlu0.b32.start [1/16] (narrow) %v1223_v19, 8  ;;  %v2604_v39 = vmul.f32 %v2546_v56, %v2095_v61  ;;  %v1109_v37 = vmul.f32 %v2546_v56, %v2978_v7  ;;  %v1093_v34 = vmul.f32 %v2546_v56, %v2993_v15  ;;  %v1242_v7 = vmax.f32 %v1178_v51, 0.0  ;;  %v2994_v26 = vld [vmem:[#allocation6_spill] sm:$0xff]  ;;  %v2997_v15 = vld [vmem:[#allocation24_spill] sm:$0xff] }
 0x21f   :  { %v2612_v49 = vmul.f32 %v2546_v56, %v2092_v58  ;;  %v2616_v46 = vmul.f32 %v2546_v56, %v2111_v11  ;;  %v2620_v61 = vmul.f32 %v2546_v56, %v2108_v6  ;;  %v2624_v53 = vmul.f32 %v2546_v56, %v2127_v30 }
 0x220   :  { %v1226_v59 = vmax.f32 %v1162_v28, 0.0  ;;  %v1179_v47 = vadd.f32 %v2548_v16, %v1109_v37  ;;  %v1163_v24 = vadd.f32 %v2548_v16, %v1093_v34  ;;  %v2630_v58 = vmul.f32 %v2546_v56, %v2124_v27 }
 0x221   :  { %v2634_v11 = vmul.f32 %v2546_v56, %v2143_v50  ;;  %v2638_v6 = vmul.f32 %v2546_v56, %v2140_v43  ;;  %v1138_v30 = vmul.f32 %v2546_v56, %v2156_v63  ;;  %v1139_v40 = vmul.f32 %v2546_v56, %v2175_v31 }
 0x222   :  { %1320 = vxpose.xlu1.b32.cont [2/16] (narrow) %v1240_v33, 8  ;;  %1288 = vxpose.xlu0.b32.cont [2/16] (narrow) %v1224_v4, 8  ;;  %v1110_v27 = vmul.f32 %v2546_v56, %v2979_v14  ;;  %v1094_v19 = vmul.f32 %v2546_v56, %v2994_v26  ;;  %v1140_v50 = vmul.f32 %v2546_v56, %v2172_v23  ;;  %v1243_v57 = vmax.f32 %v1179_v47, 0.0 }
 0x223   :  { %v1141_v43 = vmul.f32 %v2546_v56, %v2191_v55  ;;  %v1142_v63 = vmul.f32 %v2546_v56, %v2188_v52  ;;  %v1143_v31 = vmul.f32 %v2546_v56, %v2207_v35  ;;  %v1227_v36 = vmax.f32 %v1163_v24, 0.0 }
 0x224   :  { %v1180_v12 = vadd.f32 %v2548_v16, %v1110_v27  ;;  %v1164_v14 = vadd.f32 %v2548_v16, %v1094_v19  ;;  %v1144_v62 = vmul.f32 %v2546_v56, %v2204_v17  ;;  %v1145_v23 = vmul.f32 %v2546_v56, %v2223_v8 }
 0x225   :  { %v1111_v55 = vmul.f32 %v2546_v56, %v2980_v18  ;;  %v1095_v52 = vmul.f32 %v2546_v56, %v2073_v45  ;;  %v1146_v35 = vmul.f32 %v2546_v56, %v2220_v0  ;;  %v1147_v33 = vmul.f32 %v2546_v56, %v2989_v42 }
 0x226   :  { %1321 = vxpose.xlu1.b32.cont [3/16] (narrow) %v1241_v48, 8  ;;  %1289 = vxpose.xlu0.b32.cont [3/16] (narrow) %v1225_v29, 8  ;;  %v1148_v4 = vmul.f32 %v2546_v56, %v2990_v5  ;;  %v1112_v18 = vmul.f32 %v2546_v56, %v2981_v20  ;;  %v1096_v45 = vmul.f32 %v2546_v56, %v2995_v60  ;;  %v1244_v9 = vmax.f32 %v1180_v12, 0.0  ;;  %v2996_v29 = vld [vmem:[#allocation32_spill] sm:$0xff]  ;;  %v3001_v12 = vld [vmem:[#allocation9_spill] sm:$0xff]  ;;  %v3003_v60 = vld [vmem:[#allocation26_spill] sm:$0xff] }
 0x227   :  { %v1181_v17 = vadd.f32 %v2548_v16, %v1111_v55  ;;  %v1165_v8 = vadd.f32 %v2548_v16, %v1095_v52  ;;  %v1228_v0 = vmax.f32 %v1164_v14, 0.0  ;;  %v1137_v42 = vmul.f32 %v2546_v56, %v2159_v2 }
 0x228   :  { %v1121_v5 = vmul.f32 %v2546_v56, %v2261_v10  ;;  %v2683_v44 = vadd.f32 %v2548_v16, %v1138_v30  ;;  %v2686_v41 = vadd.f32 %v2548_v16, %v1122_v21  ;;  %v2689_v38 = vadd.f32 %v2548_v16, %v1139_v40 }
 0x229   :  { %v2692_v20 = vadd.f32 %v2548_v16, %v1123_v32  ;;  %v2695_v48 = vadd.f32 %v2548_v16, %v1137_v42  ;;  %v2701_v10 = vadd.f32 %v2548_v16, %v1140_v50  ;;  %v1149_v21 = vmul.f32 %v2546_v56, %v2996_v29 }
 0x22a   :  { %1322 = vxpose.xlu1.b32.cont [4/16] (narrow) %v1242_v7, 8  ;;  %1290 = vxpose.xlu0.b32.cont [4/16] (narrow) %v1226_v59, 8  ;;  %v2698_v2 = vadd.f32 %v2548_v16, %v1121_v5  ;;  %v1245_v51 = vmax.f32 %v1181_v17, 0.0  ;;  %v1182_v28 = vadd.f32 %v2548_v16, %v1112_v18  ;;  %v1166_v32 = vadd.f32 %v2548_v16, %v1096_v45  ;;  %v2998_v7 = vld [vmem:[#allocation10_spill] sm:$0xff]  ;;  %v3004_v45 = vld [vmem:[#allocation12_spill] sm:$0xff] }
 0x22b   :  { %v1229_v37 = vmax.f32 %v1165_v8, 0.0  ;;  %v1113_v34 = vmul.f32 %v2546_v56, %v2997_v15  ;;  %v1097_v59 = vmul.f32 %v2546_v56, %v2998_v7  ;;  %v2713_v47 = vadd.f32 %v2548_v16, %v2582_v54 }
 0x22c   :  { %v2716_v24 = vadd.f32 %v2548_v16, %v1141_v43  ;;  %v2720_v30 = vadd.f32 %v2548_v16, %v2588_v1  ;;  %v2723_v40 = vadd.f32 %v2548_v16, %v1142_v63  ;;  %v2727_v27 = vadd.f32 %v2548_v16, %v2592_v13  ;;  %v2999_v1 = vld [vmem:[#allocation31_spill] sm:$0xff] }
 0x22d   :  { %v2730_v26 = vadd.f32 %v2548_v16, %v1143_v31  ;;  %v2734_v54 = vadd.f32 %v2548_v16, %v2596_v25  ;;  %v2737_v19 = vadd.f32 %v2548_v16, %v1144_v62  ;;  %v1150_v50 = vmul.f32 %v2546_v56, %v2999_v1 }
 0x22e   :  { %1323 = vxpose.xlu1.b32.cont [5/16] (narrow) %v1243_v57, 8  ;;  %1291 = vxpose.xlu0.b32.cont [5/16] (narrow) %v1227_v36, 8  ;;  %v1246_v43 = vmax.f32 %v1182_v28, 0.0  ;;  %v1230_v63 = vmax.f32 %v1166_v32, 0.0  ;;  %v3000_v57 = vld [vmem:[#allocation23_spill] sm:$0xff]  ;;  %v1183_v36 = vadd.f32 %v2548_v16, %v1113_v34  ;;  %v1167_v31 = vadd.f32 %v2548_v16, %v1097_v59 }
 0x22f   :  { %v1114_v13 = vmul.f32 %v2546_v56, %v3000_v57  ;;  %v1098_v14 = vmul.f32 %v2546_v56, %v3001_v12  ;;  %v2749_v25 = vadd.f32 %v2548_v16, %v2600_v22  ;;  %v2752_v62 = vadd.f32 %v2548_v16, %v1145_v23  ;;  %v3008_v57 = vld [vmem:[#allocation14_spill] sm:$0xff] }
 0x230   :  { %v2756_v55 = vadd.f32 %v2548_v16, %v2604_v39  ;;  %v2759_v52 = vadd.f32 %v2548_v16, %v1146_v35  ;;  %v2763_v17 = vadd.f32 %v2548_v16, %v2612_v49  ;;  %v2766_v8 = vadd.f32 %v2548_v16, %v1147_v33  ;;  %v3002_v39 = vld [vmem:[#allocation35_spill] sm:$0xff] }
 0x231   :  { %v2770_v22 = vadd.f32 %v2548_v16, %v2616_v46  ;;  %v2773_v23 = vadd.f32 %v2548_v16, %v1148_v4  ;;  %v1152_v35 = vmul.f32 %v2546_v56, %v3002_v39  ;;  %v1184_v18 = vadd.f32 %v2548_v16, %v1114_v13  ;;  %v3009_v39 = vld [vmem:[#allocation29_spill] sm:$0xff] }
 0x232   :  { %1324 = vxpose.xlu1.b32.cont [6/16] (narrow) %v1244_v9, 8  ;;  %1292 = vxpose.xlu0.b32.cont [6/16] (narrow) %v1228_v0, 8  ;;  %v1115_v49 = vmul.f32 %v2546_v56, %v3003_v60  ;;  %v1099_v9 = vmul.f32 %v2546_v56, %v3004_v45  ;;  %v1247_v33 = vmax.f32 %v1183_v36, 0.0  ;;  %v1231_v0 = vmax.f32 %v1167_v31, 0.0 }
 0x233   :  { %v1168_v42 = vadd.f32 %v2548_v16, %v1098_v14  ;;  %v2785_v46 = vadd.f32 %v2548_v16, %v2620_v61  ;;  %v2788_v4 = vadd.f32 %v2548_v16, %v1149_v21  ;;  %v2792_v5 = vadd.f32 %v2548_v16, %v2624_v53 }
 0x234   :  { %v2795_v29 = vadd.f32 %v2548_v16, %v1150_v50  ;;  %v2803_v61 = vadd.f32 %v2548_v16, %v2574_v3  ;;  %v2807_v21 = vadd.f32 %v2548_v16, %v2634_v11  ;;  %v2810_v53 = vadd.f32 %v2548_v16, %v1152_v35  ;;  %v3005_v3 = vld [vmem:[#allocation25_spill] sm:$0xff]  ;;  %v3006_v11 = vld [vmem:[#allocation11_spill] sm:$0xff] }
 0x235   :  { %v1185_v28 = vadd.f32 %v2548_v16, %v1115_v49  ;;  %v1248_v32 = vmax.f32 %v1184_v18, 0.0  ;;  %v2816_v15 = vadd.f32 %v2548_v16, %v2638_v6  ;;  %v1116_v34 = vmul.f32 %v2546_v56, %v3005_v3  ;;  %v3010_v18 = vld [vmem:[#allocation13_spill] sm:$0xff] }
 0x236   :  { %1325 = vxpose.xlu1.b32.cont [7/16] (narrow) %v1245_v51, 8  ;;  %1293 = vxpose.xlu0.b32.cont [7/16] (narrow) %v1229_v37, 8  ;;  %v2799_v51 = vadd.f32 %v2548_v16, %v2630_v58  ;;  %v1232_v37 = vmax.f32 %v1168_v42, 0.0  ;;  %v1169_v58 = vadd.f32 %v2548_v16, %v1099_v9  ;;  %v1100_v7 = vmul.f32 %v2546_v56, %v3006_v11  ;;  %v3013_v11 = vld [vmem:[#allocation33_spill] sm:$0xff] }
 0x237   :  { %v1249_v59 = vmax.f32 %v1185_v28, 0.0  ;;  %v1186_v50 = vadd.f32 %v2548_v16, %v1116_v34  ;;  %v1101_v13 = vmul.f32 %v2546_v56, %v3008_v57  ;;  %v1118_v35 = vmul.f32 %v2546_v56, %v3009_v39  ;;  %v3012_v28 = vld [vmem:[#allocation16_spill] sm:$0xff] }
 0x238   :  { %v1233_v1 = vmax.f32 %v1169_v58, 0.0  ;;  %v1102_v60 = vmul.f32 %v2546_v56, %v3010_v18  ;;  %v1274_v39 = vmax.f32 %v2701_v10, 0.0  ;;  %v1261_v10 = vmax.f32 %v2734_v54, 0.0 }
 0x239   :  { %v1250_v36 = vmax.f32 %v1186_v50, 0.0  ;;  %v1171_v14 = vadd.f32 %v2548_v16, %v1101_v13  ;;  %v1188_v9 = vadd.f32 %v2548_v16, %v1118_v35  ;;  %v1281_v54 = vmax.f32 %v2766_v8, 0.0 }
 0x23a   :  { %1326 = vxpose.xlu1.b32.cont [8/16] (narrow) %v1246_v43, 8  ;;  %1294 = vxpose.xlu0.b32.cont [8/16] (narrow) %v1230_v63, 8  ;;  %v1170_v43 = vadd.f32 %v2548_v16, %v1100_v7  ;;  %v3007_v63 = vld [vmem:[#allocation30_spill] sm:$0xff]  ;;  %v1120_v7 = vmul.f32 %v2546_v56, %v3013_v11  ;;  %v1268_v8 = vmax.f32 %v2799_v51, 0.0 }
 0x23b   :  { %v1117_v6 = vmul.f32 %v2546_v56, %v3007_v63  ;;  %v1235_v45 = vmax.f32 %v1171_v14, 0.0  ;;  %v1257_v14 = vmax.f32 %v2692_v20, 0.0  ;;  %v1277_v20 = vmax.f32 %v2730_v26, 0.0 }
 0x23c   :  { %v1234_v31 = vmax.f32 %v1170_v43, 0.0  ;;  %v1190_v63 = vadd.f32 %v2548_v16, %v1120_v7  ;;  %v1264_v26 = vmax.f32 %v2763_v17, 0.0  ;;  %v1284_v17 = vmax.f32 %v2795_v29, 0.0 }
 0x23d   :  { %v1187_v12 = vadd.f32 %v2548_v16, %v1117_v6 }
 0x23e   :  { %1327 = vxpose.xlu1.b32.cont [9/16] (narrow) %v1247_v33, 8  ;;  %1295 = vxpose.xlu0.b32.cont [9/16] (narrow) %v1231_v0, 8  ;;  %v1172_v33 = vadd.f32 %v2548_v16, %v1102_v60  ;;  %v3011_v0 = vld [vmem:[#allocation34_spill] sm:$0xff]  ;;  %v1254_v57 = vmax.f32 %v1190_v63, 0.0 }
 0x23f   :  { %v1251_v49 = vmax.f32 %v1187_v12, 0.0  ;;  %v1119_v42 = vmul.f32 %v2546_v56, %v3011_v0  ;;  %v1256_v12 = vmax.f32 %v2686_v41, 0.0  ;;  %v1276_v41 = vmax.f32 %v2723_v40, 0.0 }
 0x240   :  { %v1236_v58 = vmax.f32 %v1172_v33, 0.0  ;;  %v1263_v40 = vmax.f32 %v2756_v55, 0.0  ;;  %v1283_v55 = vmax.f32 %v2788_v4, 0.0  ;;  %v1270_v4 = vmax.f32 %v2816_v15, 0.0 }
 0x241   :  { %v1189_v3 = vadd.f32 %v2548_v16, %v1119_v42 }
 0x242   :  { %1328 = vxpose.xlu1.b32.cont [10/16] (narrow) %v1248_v32, 8  ;;  %1296 = vxpose.xlu0.b32.cont [10/16] (narrow) %v1232_v37, 8  ;;  %v1103_v32 = vmul.f32 %v2546_v56, %v3012_v28  ;;  %v1252_v37 = vmax.f32 %v1188_v9, 0.0 }
 0x243   :  { %v1253_v50 = vmax.f32 %v1189_v3, 0.0 }
 0x244   :  { %v1173_v34 = vadd.f32 %v2548_v16, %v1103_v32 }
 0x246   :  { %1329 = vxpose.xlu1.b32.cont [11/16] (narrow) %v1249_v59, 8  ;;  %1297 = vxpose.xlu0.b32.cont [11/16] (narrow) %v1233_v1, 8  ;;  %v3014_v59 = vld [vmem:[#allocation15_spill] sm:$0xff]  ;;  %v1237_v43 = vmax.f32 %v1173_v34, 0.0 }
 0x247   :  { %v1104_v1 = vmul.f32 %v2546_v56, %v3014_v59  ;;  %v1272_v56 = vmax.f32 %v2683_v44, 0.0  ;;  %v1259_v44 = vmax.f32 %v2720_v30, 0.0  ;;  %v1279_v30 = vmax.f32 %v2752_v62, 0.0 }
 0x248   :  { %v1266_v62 = vmax.f32 %v2785_v46, 0.0  ;;  %v1286_v46 = vmax.f32 %v2810_v53, 0.0 }
 0x249   :  { %v1174_v6 = vadd.f32 %v2548_v16, %v1104_v1  ;;  %v1273_v16 = vmax.f32 %v2689_v38, 0.0  ;;  %v1260_v38 = vmax.f32 %v2727_v27, 0.0  ;;  %v1280_v27 = vmax.f32 %v2759_v52, 0.0 }
 0x24a   :  { %1330 = vxpose.xlu1.b32.cont [12/16] (narrow) %v1250_v36, 8  ;;  %1298 = vxpose.xlu0.b32.cont [12/16] (narrow) %v1234_v31, 8  ;;  %v1271_v36 = vmax.f32 %v2695_v48, 0.0  ;;  %v1255_v31 = vmax.f32 %v2698_v2, 0.0  ;;  %v1258_v48 = vmax.f32 %v2713_v47, 0.0  ;;  %v1275_v2 = vmax.f32 %v2716_v24, 0.0 }
 0x24b   :  { %v1238_v13 = vmax.f32 %v1174_v6, 0.0  ;;  %v1278_v47 = vmax.f32 %v2737_v19, 0.0  ;;  %v1262_v24 = vmax.f32 %v2749_v25, 0.0  ;;  %v1265_v19 = vmax.f32 %v2770_v22, 0.0 }
 0x24c   :  { %v1282_v25 = vmax.f32 %v2773_v23, 0.0  ;;  %v1267_v52 = vmax.f32 %v2792_v5, 0.0  ;;  %v1285_v22 = vmax.f32 %v2803_v61, 0.0  ;;  %v1269_v23 = vmax.f32 %v2807_v21, 0.0 }
 0x24e   :  { %1331 = vxpose.xlu1.b32.cont [13/16] (narrow) %v1251_v49, 8  ;;  %1299 = vxpose.xlu0.b32.cont [13/16] (narrow) %v1235_v45, 8 }
 0x252   :  { %1332 = vxpose.xlu1.b32.cont [14/16] (narrow) %v1252_v37, 8  ;;  %1300 = vxpose.xlu0.b32.cont [14/16] (narrow) %v1236_v58, 8 }
 0x256   :  { %1333 = vxpose.xlu1.b32.cont [15/16] (narrow) %v1253_v50, 8  ;;  %1301 = vxpose.xlu0.b32.cont [15/16] (narrow) %v1237_v43, 8 }
 0x25a   :  { %1334 = vxpose.xlu1.b32.end [16/16] (narrow) %v1254_v57, 8  ;;  %1302 = vxpose.xlu0.b32.end [16/16] (narrow) %v1238_v13, 8 }
 0x25e   :  { %1383 = vxpose.xlu1.b32.start [1/16] (narrow) %v1271_v36, 8  ;;  %1351 = vxpose.xlu0.b32.start [1/16] (narrow) %v1255_v31, 8 }
 0x262   :  { %1384 = vxpose.xlu1.b32.cont [2/16] (narrow) %v1272_v56, 8  ;;  %1352 = vxpose.xlu0.b32.cont [2/16] (narrow) %v1256_v12, 8 }
 0x266   :  { %1385 = vxpose.xlu1.b32.cont [3/16] (narrow) %v1273_v16, 8  ;;  %1353 = vxpose.xlu0.b32.cont [3/16] (narrow) %v1257_v14, 8 }
 0x26a   :  { %1386 = vxpose.xlu1.b32.cont [4/16] (narrow) %v1274_v39, 8  ;;  %1354 = vxpose.xlu0.b32.cont [4/16] (narrow) %v1258_v48, 8 }
 0x26e   :  { %1387 = vxpose.xlu1.b32.cont [5/16] (narrow) %v1275_v2, 8  ;;  %1355 = vxpose.xlu0.b32.cont [5/16] (narrow) %v1259_v44, 8 }
 0x272   :  { %1388 = vxpose.xlu1.b32.cont [6/16] (narrow) %v1276_v41, 8  ;;  %1356 = vxpose.xlu0.b32.cont [6/16] (narrow) %v1260_v38, 8 }
 0x276   :  { %1389 = vxpose.xlu1.b32.cont [7/16] (narrow) %v1277_v20, 8  ;;  %1357 = vxpose.xlu0.b32.cont [7/16] (narrow) %v1261_v10, 8 }
 0x27a   :  { %1390 = vxpose.xlu1.b32.cont [8/16] (narrow) %v1278_v47, 8  ;;  %1358 = vxpose.xlu0.b32.cont [8/16] (narrow) %v1262_v24, 8 }
 0x27e   :  { %1391 = vxpose.xlu1.b32.cont [9/16] (narrow) %v1279_v30, 8  ;;  %1359 = vxpose.xlu0.b32.cont [9/16] (narrow) %v1263_v40, 8 }
 0x282   :  { %1392 = vxpose.xlu1.b32.cont [10/16] (narrow) %v1280_v27, 8  ;;  %1360 = vxpose.xlu0.b32.cont [10/16] (narrow) %v1264_v26, 8 }
 0x286   :  { %1393 = vxpose.xlu1.b32.cont [11/16] (narrow) %v1281_v54, 8  ;;  %1361 = vxpose.xlu0.b32.cont [11/16] (narrow) %v1265_v19, 8 }
 0x28a   :  { %1394 = vxpose.xlu1.b32.cont [12/16] (narrow) %v1282_v25, 8  ;;  %1362 = vxpose.xlu0.b32.cont [12/16] (narrow) %v1266_v62, 8 }
 0x28e   :  { %1395 = vxpose.xlu1.b32.cont [13/16] (narrow) %v1283_v55, 8  ;;  %1363 = vxpose.xlu0.b32.cont [13/16] (narrow) %v1267_v52, 8 }
 0x292   :  { %1396 = vxpose.xlu1.b32.cont [14/16] (narrow) %v1284_v17, 8  ;;  %1364 = vxpose.xlu0.b32.cont [14/16] (narrow) %v1268_v8, 8 }
 0x296   :  { %1397 = vxpose.xlu1.b32.cont [15/16] (narrow) %v1285_v22, 8  ;;  %1365 = vxpose.xlu0.b32.cont [15/16] (narrow) %v1269_v23, 8 }
 0x29a   :  { %1398 = vxpose.xlu1.b32.end [16/16] (narrow) %v1286_v46, 8  ;;  %1366 = vxpose.xlu0.b32.end [16/16] (narrow) %v1270_v4, 8 }
 0x29e   :  { %v1335_v5 = vpop.trf.xlu1  ;;  %v1303_v35 = vpop.trf.xlu0 }
 0x29f   :  { %1416 = vst [vmem:[#allocation2 + $0x8] sm:$0xff] %v1335_v5  ;;  %1415 = vst [vmem:[#allocation2] sm:$0xff] %v1303_v35 }
 0x2de   :  { %v1399_v29 = vpop.trf.xlu1  ;;  %v1367_v51 = vpop.trf.xlu0 }
 0x2df   :  { %1418 = vst [vmem:[#allocation2 + $0x18] sm:$0xff] %v1399_v29  ;;  %1417 = vst [vmem:[#allocation2 + $0x10] sm:$0xff] %v1367_v51 }
 0x2e0   :  { %1702 = shalt.err (!%p1699_p4)
}
 0x2e1   :  { %s1703_s8 = scalar_lea.hbm %s2897_s5, 512 }
 0x2e2   :  { %p1704_p5 = scmp.ne.s32.totalorder %s2897_s5, %s1703_s8  ;;  %p1707_p6 = scmp.lt.u32.totalorder %s1703_s8, %s2897_s5 }
 0x2e4   :  { %p1709_p7 = pnand %p1707_p6, %p1704_p5 }
 0x2e6   :  { %1712 = shalt.err (!%p1709_p7)
}
 0x2e7   :  { %1428 = dma.vmem_to_hbm [thread:$0]  %s1426_s4, 512, %s2897_s5, [#allocation3]  }
 0x2e8   :  { %1713 = dma.done.wait [#allocation3], 512  }
 0x2e9   :  { %1714 = vsyncadd [#allocation3], 4294966784 }
 0x2ea   :  { %1432 = vsyncpa [#allocation3], 1 }

</bundles_post_ra>
